<compile_context>
chip_gen: v7x
topology: tpu7x:2x2x1
jax: 0.10.0
libtpu: 0.0.40
codegen_flags: <defaults>
</compile_context>

<pallas_src>
import functools
import math

import jax
import jax.numpy as jnp
from jax import lax
from jax.experimental import pallas as pl
from jax.experimental.pallas import tpu as pltpu

_INV_SQRT2 = 1.0 / math.sqrt(2.0)


def _layernorm(x, w, b, eps):
    mu = jnp.mean(x, axis=-1, keepdims=True)
    xc = x - mu
    var = jnp.mean(xc * xc, axis=-1, keepdims=True)
    return xc * lax.rsqrt(var + eps) * w + b


def ca_block_kernel(
    cls_ref, pch_ref,                 # (Bt*Nq, C), (Bt*Np, C)
    ln1_w_ref, ln1_b_ref,             # (1, C) f32
    wq_ref, wk_ref, wv_ref,           # (C, C) bf16  (wq pre-scaled by head_dim**-0.5)
    wproj_ref, bproj_ref,             # (C, C) bf16, (1, C) f32
    ln2_w_ref, ln2_b_ref,             # (1, C) f32
    w1_ref, b1_ref,                   # (C, Hd) bf16, (1, Hd) f32
    w2_ref, b2_ref,                   # (Hd, C) bf16, (1, C) f32
    out_ref,                          # (Bt*Nq, C)
    xcat_scr,                         # VMEM (Bt, Nq+Np, C) bf16
    *, num_heads, nq, npch, bt, eps,
):
    f32, bf16 = jnp.float32, jnp.bfloat16
    C = cls_ref.shape[-1]
    hd = C // num_heads
    nk = nq + npch

    ln1_w, ln1_b = ln1_w_ref[...], ln1_b_ref[...]

    # --- norm1 (f32 math) -> bf16 MXU operands ---
    n_cls = _layernorm(cls_ref[...].astype(f32), ln1_w, ln1_b, eps).astype(bf16)
    n_pch = _layernorm(pch_ref[...].astype(f32), ln1_w, ln1_b, eps).astype(bf16)

    # Per-batch concatenated K/V token buffer [cls_b ; pch_b]: two lane-dense block
    # stores.  Every (row, lane) of the scratch is rewritten each grid step, so no
    # stale data can leak across grid iterations.
    xcat_scr[:, 0:nq, :] = n_cls.reshape(bt, nq, C)
    xcat_scr[:, nq:nk, :] = n_pch.reshape(bt, npch, C)
    x_cat = xcat_scr[...].reshape(bt * nk, C)                    # (Bt*Nk, C) bf16

    # --- projections: one big matmul each; cast to bf16 immediately so the full-size
    #     f32 copies never stay live alongside their bf16 twins.
    q2 = jnp.dot(n_cls, wq_ref[...], preferred_element_type=f32).astype(bf16)
    k2 = jnp.dot(x_cat, wk_ref[...], preferred_element_type=f32).astype(bf16)
    v2 = jnp.dot(x_cat, wv_ref[...], preferred_element_type=f32).astype(bf16)

    # --- attention: per head, batched-over-Bt logits / softmax / PV.  H is a short
    #     static unroll; each iteration is one large batched matmul, and only the
    #     small (Bt, Nq, hd) head output survives the iteration.
    head_outs = []
    for h in range(num_heads):
        c0 = h * hd
        qh = q2[:, c0:c0 + hd].reshape(bt, nq, hd)
        kh = k2[:, c0:c0 + hd].reshape(bt, nk, hd)
        vh = v2[:, c0:c0 + hd].reshape(bt, nk, hd)
        logits = jnp.einsum("bqd,bkd->bqk", qh, kh,
                            preferred_element_type=f32)          # (Bt, Nq, Nk)
        m = jnp.max(logits, axis=-1, keepdims=True)
        e = jnp.exp(logits - m)
        inv = pl.reciprocal(jnp.sum(e, axis=-1, keepdims=True), approx=True)
        oh = jnp.einsum("bqk,bkd->bqd", e.astype(bf16), vh,
                        preferred_element_type=f32) * inv        # (Bt, Nq, hd)
        head_outs.append(oh)

    # Lane-dense head concat (no masked sub-lane scratch stores) -> single output
    # projection over all heads and all Bt*Nq rows.
    attn_out = jnp.concatenate(head_outs, axis=-1).reshape(bt * nq, C)
    x_cls = jnp.dot(attn_out.astype(bf16), wproj_ref[...],
                    preferred_element_type=f32) + bproj_ref[...]
    cls1 = cls_ref[...].astype(f32) + x_cls                      # residual 1 (re-read ref)

    # --- norm2 + MLP (fc1 -> exact erf GELU -> fc2) ---
    n2 = _layernorm(cls1, ln2_w_ref[...], ln2_b_ref[...], eps)
    h1 = jnp.dot(n2.astype(bf16), w1_ref[...], preferred_element_type=f32) + b1_ref[...]
    g = 0.5 * h1 * (1.0 + lax.erf(h1 * _INV_SQRT2))              # PyTorch-default GELU
    mlp = jnp.dot(g.astype(bf16), w2_ref[...], preferred_element_type=f32) + b2_ref[...]

    out_ref[...] = (cls1 + mlp).astype(out_ref.dtype)            # residual 2


def _select_tiling(B, nq, npch, C, hidden, in_bytes):
    """Generation-aware batch tile (bt) and VMEM limit based on a footprint estimate."""
    kind = ""
    try:
        kind = jax.devices()[0].device_kind.lower()
    except Exception:
        pass
    is_v7 = "v7" in kind
    if is_v7:
        vmem_limit = 48 * 1024 * 1024        # v7x: 64 MiB physical VMEM per core
    elif ("v6" in kind) or ("v5" in kind):
        vmem_limit = 96 * 1024 * 1024        # v5e/v6e: 128 MiB physical VMEM
    else:
        vmem_limit = 64 * 1024 * 1024        # unknown generation: stay conservative
    budget = int(vmem_limit * 0.8)

    nk = nq + npch

    def footprint(d):
        rows_q, rows_k = d * nq, d * nk
        io = 2 * (d * nq * C + d * npch * C) * in_bytes + 2 * d * nq * C * 4
        # TODO(synk): single-buffer the constant-index weight specs (pipeline_mode)
        # once verified; until then count them double-buffered.
        weights = 2 * (4 * C * C + 2 * C * hidden) * 2           # bf16, double-buffered
        live = (rows_k * C * 2                                    # x_cat scratch (bf16)
                + (rows_q + 2 * rows_k) * C * 2                   # q2 / k2 / v2 (bf16)
                + rows_q * nk * 4 * 2                             # logits + exp (f32)
                + rows_q * C * 4                                  # head outputs (f32)
                + rows_q * C * 4 * 2                              # x_cls + cls1 (f32)
                + rows_q * hidden * 4 * 2)                        # h1 + GELU (f32)
        return io + weights + live

    divs = [d for d in range(1, B + 1) if B % d == 0]
    valid = [d for d in divs
             if d == B or ((d * nq) % 8 == 0 and (d * npch) % 8 == 0)]
    if is_v7 and B >= 2:
        two_step = [d for d in valid if B // d >= 2]   # keep both v7x TensorCores busy
        if two_step:
            valid = two_step
    fitting = [d for d in valid if footprint(d) <= budget]
    bt = max(fitting) if fitting else min(valid)
    return bt, vmem_limit


def ca_block(cls, pch, params, num_heads, eps=1e-5):
    """cls: (B, Hp, Wp, C), pch: (B, Hq, Wq, C) -> (B, Hp, Wp, C)."""
    B, Hp, Wp, C = cls.shape
    _, Hq, Wq, _ = pch.shape
    assert C % num_heads == 0, "C must be divisible by num_heads"
    Nq, Np = Hp * Wp, Hq * Wq
    hd = C // num_heads
    scale = hd ** -0.5
    hidden = params["w1"].shape[-1]

    bt, vmem_limit = _select_tiling(B, Nq, Np, C, hidden, cls.dtype.itemsize)
    grid = (B // bt,)

    # token-major 2-D views; no wrapper-side concat (kernel packs both refs)
    cls2 = cls.reshape(B * Nq, C)
    pch2 = pch.reshape(B * Np, C)

    bf16, f32 = jnp.bfloat16, jnp.float32
    wq = (params["wq"].astype(f32) * scale).astype(bf16)   # fold q scale into weight
    wk = params["wk"].astype(bf16)
    wv = params["wv"].astype(bf16)
    wproj = params["wproj"].astype(bf16)
    w1 = params["w1"].astype(bf16)
    w2 = params["w2"].astype(bf16)
    ln1_w, ln1_b = params["ln1_w"].astype(f32), params["ln1_b"].astype(f32)
    ln2_w, ln2_b = params["ln2_w"].astype(f32), params["ln2_b"].astype(f32)
    bproj, b1, b2 = (params["bproj"].astype(f32), params["b1"].astype(f32),
                     params["b2"].astype(f32))

    def full(arr):
        return pl.BlockSpec(arr.shape, lambda b: (0, 0))

    kernel = functools.partial(
        ca_block_kernel, num_heads=num_heads, nq=Nq, npch=Np, bt=bt, eps=eps,
    )

    out = pl.pallas_call(
        kernel,
        out_shape=jax.ShapeDtypeStruct((B * Nq, C), cls.dtype),
        grid=grid,
        in_specs=[
            pl.BlockSpec((bt * Nq, C), lambda b: (b, 0)),   # cls tokens
            pl.BlockSpec((bt * Np, C), lambda b: (b, 0)),   # pch tokens
            full(ln1_w), full(ln1_b),
            full(wq), full(wk), full(wv),
            full(wproj), full(bproj),
            full(ln2_w), full(ln2_b),
            full(w1), full(b1), full(w2), full(b2),
        ],
        out_specs=pl.BlockSpec((bt * Nq, C), lambda b: (b, 0)),
        scratch_shapes=[pltpu.VMEM((bt, Nq + Np, C), jnp.bfloat16)],
        compiler_params=pltpu.CompilerParams(
            dimension_semantics=("parallel",),        # megacore sharding on v7x
            vmem_limit_bytes=int(vmem_limit),
        ),
    )(cls2, pch2, ln1_w, ln1_b, wq, wk, wv, wproj, bproj,
      ln2_w, ln2_b, w1, b1, w2, b2)
    # TODO(synk): for very large C, additionally tile w1/w2 along the hidden dim to
    # fit the v7x 64 MiB VMEM instead of only shrinking bt.
    return out.reshape(B, Hp, Wp, C)


def ca_block_reference(cls, pch, params, num_heads, eps=1e-5):
    """Pure-JAX f32 reference mirroring the PyTorch forward (dropout/drop_path identity)."""
    B, Hp, Wp, C = cls.shape
    hd = C // num_heads
    scale = hd ** -0.5

    def ln(x, w, b):
        mu = x.mean(-1, keepdims=True)
        var = ((x - mu) ** 2).mean(-1, keepdims=True)
        return (x - mu) / jnp.sqrt(var + eps) * w[0] + b[0]

    n_cls = ln(cls, params["ln1_w"], params["ln1_b"])
    n_pch = ln(pch, params["ln1_w"], params["ln1_b"])
    x = jnp.concatenate([n_cls, n_pch], axis=1)                  # (B, Hp+Hq, Wp, C)

    q = (n_cls @ params["wq"]).reshape(B, -1, num_heads, hd).transpose(2, 0, 1, 3) * scale
    k = (x @ params["wk"]).reshape(B, -1, num_heads, hd).transpose(2, 0, 1, 3)
    v = (x @ params["wv"]).reshape(B, -1, num_heads, hd).transpose(2, 0, 1, 3)
    attn = jax.nn.softmax(q @ jnp.swapaxes(k, -2, -1), axis=-1)
    x_cls = (attn @ v).reshape(num_heads, B, Hp, Wp, hd).transpose(1, 2, 3, 0, 4).reshape(B, Hp, Wp, C)
    x_cls = x_cls @ params["wproj"] + params["bproj"][0]

    cls1 = cls + x_cls
    n2 = ln(cls1, params["ln2_w"], params["ln2_b"])
    h1 = n2 @ params["w1"] + params["b1"][0]
    g = 0.5 * h1 * (1.0 + lax.erf(h1 * _INV_SQRT2))
    mlp_out = g @ params["w2"] + params["b2"][0]
    return cls1 + mlp_out


if __name__ == "__main__":
    key = jax.random.PRNGKey(0)
    B, Hp, Wp, C = 2, 4, 4, 32
    Hq = 4                      # pch spatial rows (concatenated along dim=1)
    num_heads = 4
    mlp_ratio = 4.0
    hidden = int(C * mlp_ratio)

    ks = jax.random.split(key, 10)
    cls = jax.random.normal(ks[0], (B, Hp, Wp, C), jnp.float32)
    pch = jax.random.normal(ks[1], (B, Hq, Wp, C), jnp.float32)

    s = 0.05
    params = {
        "ln1_w": jnp.ones((1, C), jnp.float32),
        "ln1_b": jnp.zeros((1, C), jnp.float32),
        "wq": s * jax.random.normal(ks[2], (C, C), jnp.float32),
        "wk": s * jax.random.normal(ks[3], (C, C), jnp.float32),
        "wv": s * jax.random.normal(ks[4], (C, C), jnp.float32),
        "wproj": s * jax.random.normal(ks[5], (C, C), jnp.float32),
        "bproj": s * jax.random.normal(ks[6], (1, C), jnp.float32),
        "ln2_w": jnp.ones((1, C), jnp.float32),
        "ln2_b": jnp.zeros((1, C), jnp.float32),
        "w1": s * jax.random.normal(ks[7], (C, hidden), jnp.float32),
        "b1": s * jax.random.normal(ks[8], (1, hidden), jnp.float32),
        "w2": s * jax.random.normal(ks[9], (hidden, C), jnp.float32),
        "b2": jnp.zeros((1, C), jnp.float32),
    }

    out = ca_block(cls, pch, params, num_heads)
    out = jax.block_until_ready(out)

    ref = ca_block_reference(cls, pch, params, num_heads)
    assert out.shape == (B, Hp, Wp, C)
    # bf16 matmul operands (f32 accumulation) -> loosened tolerance vs f32 reference
    assert jnp.allclose(out, ref, atol=2e-2, rtol=2e-2), float(jnp.max(jnp.abs(out - ref)))
    print("KERNEL_OK")
</pallas_src>

<mosaic_0001>
module attributes {stable_mosaic.version = 11 : i64} {
  func.func @ca_block_kernel(%arg0: i32, %arg1: memref<32x32xf32, #tpu.memory_space<vmem>>, %arg2: memref<32x32xf32, #tpu.memory_space<vmem>>, %arg3: memref<1x32xf32, #tpu.memory_space<vmem>>, %arg4: memref<1x32xf32, #tpu.memory_space<vmem>>, %arg5: memref<32x32xbf16, #tpu.memory_space<vmem>>, %arg6: memref<32x32xbf16, #tpu.memory_space<vmem>>, %arg7: memref<32x32xbf16, #tpu.memory_space<vmem>>, %arg8: memref<32x32xbf16, #tpu.memory_space<vmem>>, %arg9: memref<1x32xf32, #tpu.memory_space<vmem>>, %arg10: memref<1x32xf32, #tpu.memory_space<vmem>>, %arg11: memref<1x32xf32, #tpu.memory_space<vmem>>, %arg12: memref<32x128xbf16, #tpu.memory_space<vmem>>, %arg13: memref<1x128xf32, #tpu.memory_space<vmem>>, %arg14: memref<128x32xbf16, #tpu.memory_space<vmem>>, %arg15: memref<1x32xf32, #tpu.memory_space<vmem>>, %arg16: memref<32x32xf32, #tpu.memory_space<vmem>>, %arg17: memref<2x32x32xbf16, #tpu.memory_space<vmem>>) attributes {dimension_semantics = [#tpu.dimension_semantics<parallel>], iteration_bounds = array<i64: 1>, scalar_prefetch = 0 : i64, scratch_operands = 1 : i64, tpu.core_type = #tpu.core_type<tc>, window_params = [{transform_indices = @transform_0, window_bounds = array<i64: 32, 32>}, {transform_indices = @transform_1, window_bounds = array<i64: 32, 32>}, {pipeline_mode = #tpu.pipeline_mode<synchronous>, transform_indices = @transform_2, window_bounds = array<i64: 1, 32>}, {pipeline_mode = #tpu.pipeline_mode<synchronous>, transform_indices = @transform_3, window_bounds = array<i64: 1, 32>}, {pipeline_mode = #tpu.pipeline_mode<synchronous>, transform_indices = @transform_4, window_bounds = array<i64: 32, 32>}, {pipeline_mode = #tpu.pipeline_mode<synchronous>, transform_indices = @transform_5, window_bounds = array<i64: 32, 32>}, {pipeline_mode = #tpu.pipeline_mode<synchronous>, transform_indices = @transform_6, window_bounds = array<i64: 32, 32>}, {pipeline_mode = #tpu.pipeline_mode<synchronous>, transform_indices = @transform_7, window_bounds = array<i64: 32, 32>}, {pipeline_mode = #tpu.pipeline_mode<synchronous>, transform_indices = @transform_8, window_bounds = array<i64: 1, 32>}, {pipeline_mode = #tpu.pipeline_mode<synchronous>, transform_indices = @transform_9, window_bounds = array<i64: 1, 32>}, {pipeline_mode = #tpu.pipeline_mode<synchronous>, transform_indices = @transform_10, window_bounds = array<i64: 1, 32>}, {pipeline_mode = #tpu.pipeline_mode<synchronous>, transform_indices = @transform_11, window_bounds = array<i64: 32, 128>}, {pipeline_mode = #tpu.pipeline_mode<synchronous>, transform_indices = @transform_12, window_bounds = array<i64: 1, 128>}, {pipeline_mode = #tpu.pipeline_mode<synchronous>, transform_indices = @transform_13, window_bounds = array<i64: 128, 32>}, {pipeline_mode = #tpu.pipeline_mode<synchronous>, transform_indices = @transform_14, window_bounds = array<i64: 1, 32>}, {transform_indices = @transform_15, window_bounds = array<i64: 32, 32>}]} {
    %c0 = arith.constant 0 : index
    %c0_0 = arith.constant 0 : index
    %0 = vector.load %arg3[%c0, %c0_0] : memref<1x32xf32, #tpu.memory_space<vmem>>, vector<1x32xf32>
    %c0_1 = arith.constant 0 : index
    %c0_2 = arith.constant 0 : index
    %1 = vector.load %arg4[%c0_1, %c0_2] : memref<1x32xf32, #tpu.memory_space<vmem>>, vector<1x32xf32>
    %c0_3 = arith.constant 0 : index
    %c0_4 = arith.constant 0 : index
    %2 = vector.load %arg1[%c0_3, %c0_4] : memref<32x32xf32, #tpu.memory_space<vmem>>, vector<32x32xf32>
    %cst = arith.constant dense<0.000000e+00> : vector<32xf32>
    %3 = vector.multi_reduction <add>, %2, %cst [1] : vector<32x32xf32> to vector<32xf32>
    %4 = vector.shape_cast %3 : vector<32xf32> to vector<32x1xf32>
    %cst_5 = arith.constant 3.200000e+01 : f32
    %5 = vector.broadcast %cst_5 : f32 to vector<32x1xf32>
    %6 = arith.divf %4, %5 : vector<32x1xf32>
    %7 = vector.broadcast %6 : vector<32x1xf32> to vector<32x32xf32>
    %8 = arith.subf %2, %7 : vector<32x32xf32>
    %9 = arith.mulf %8, %8 : vector<32x32xf32>
    %cst_6 = arith.constant dense<0.000000e+00> : vector<32xf32>
    %10 = vector.multi_reduction <add>, %9, %cst_6 [1] : vector<32x32xf32> to vector<32xf32>
    %11 = vector.shape_cast %10 : vector<32xf32> to vector<32x1xf32>
    %cst_7 = arith.constant 3.200000e+01 : f32
    %12 = vector.broadcast %cst_7 : f32 to vector<32x1xf32>
    %13 = arith.divf %11, %12 : vector<32x1xf32>
    %cst_8 = arith.constant 9.99999974E-6 : f32
    %14 = vector.broadcast %cst_8 : f32 to vector<32x1xf32>
    %15 = arith.addf %13, %14 : vector<32x1xf32>
    %16 = math.rsqrt %15 : vector<32x1xf32>
    %17 = vector.broadcast %16 : vector<32x1xf32> to vector<32x32xf32>
    %18 = arith.mulf %8, %17 : vector<32x32xf32>
    %19 = vector.broadcast %0 : vector<1x32xf32> to vector<32x32xf32>
    %20 = arith.mulf %18, %19 : vector<32x32xf32>
    %21 = vector.broadcast %1 : vector<1x32xf32> to vector<32x32xf32>
    %22 = arith.addf %20, %21 : vector<32x32xf32>
    %23 = arith.truncf %22 : vector<32x32xf32> to vector<32x32xbf16>
    %c0_9 = arith.constant 0 : index
    %c0_10 = arith.constant 0 : index
    %24 = vector.load %arg2[%c0_9, %c0_10] : memref<32x32xf32, #tpu.memory_space<vmem>>, vector<32x32xf32>
    %cst_11 = arith.constant dense<0.000000e+00> : vector<32xf32>
    %25 = vector.multi_reduction <add>, %24, %cst_11 [1] : vector<32x32xf32> to vector<32xf32>
    %26 = vector.shape_cast %25 : vector<32xf32> to vector<32x1xf32>
    %cst_12 = arith.constant 3.200000e+01 : f32
    %27 = vector.broadcast %cst_12 : f32 to vector<32x1xf32>
    %28 = arith.divf %26, %27 : vector<32x1xf32>
    %29 = vector.broadcast %28 : vector<32x1xf32> to vector<32x32xf32>
    %30 = arith.subf %24, %29 : vector<32x32xf32>
    %31 = arith.mulf %30, %30 : vector<32x32xf32>
    %cst_13 = arith.constant dense<0.000000e+00> : vector<32xf32>
    %32 = vector.multi_reduction <add>, %31, %cst_13 [1] : vector<32x32xf32> to vector<32xf32>
    %33 = vector.shape_cast %32 : vector<32xf32> to vector<32x1xf32>
    %cst_14 = arith.constant 3.200000e+01 : f32
    %34 = vector.broadcast %cst_14 : f32 to vector<32x1xf32>
    %35 = arith.divf %33, %34 : vector<32x1xf32>
    %cst_15 = arith.constant 9.99999974E-6 : f32
    %36 = vector.broadcast %cst_15 : f32 to vector<32x1xf32>
    %37 = arith.addf %35, %36 : vector<32x1xf32>
    %38 = math.rsqrt %37 : vector<32x1xf32>
    %39 = vector.broadcast %38 : vector<32x1xf32> to vector<32x32xf32>
    %40 = arith.mulf %30, %39 : vector<32x32xf32>
    %41 = vector.broadcast %0 : vector<1x32xf32> to vector<32x32xf32>
    %42 = arith.mulf %40, %41 : vector<32x32xf32>
    %43 = vector.broadcast %1 : vector<1x32xf32> to vector<32x32xf32>
    %44 = arith.addf %42, %43 : vector<32x32xf32>
    %45 = arith.truncf %44 : vector<32x32xf32> to vector<32x32xbf16>
    %46 = vector.shape_cast %23 : vector<32x32xbf16> to vector<2x16x32xbf16>
    %c0_16 = arith.constant 0 : index
    %c0_17 = arith.constant 0 : index
    %c0_18 = arith.constant 0 : index
    %47 = vector.load %arg17[%c0_16, %c0_17, %c0_18] : memref<2x32x32xbf16, #tpu.memory_space<vmem>>, vector<2x16x32xbf16>
    tpu.vector_store %arg17[%c0_16, %c0_17, %c0_18], %46 {strides = array<i32>} : memref<2x32x32xbf16, #tpu.memory_space<vmem>>, vector<2x16x32xbf16>,
    %48 = vector.shape_cast %45 : vector<32x32xbf16> to vector<2x16x32xbf16>
    %c0_19 = arith.constant 0 : index
    %c16 = arith.constant 16 : index
    %c0_20 = arith.constant 0 : index
    %49 = vector.load %arg17[%c0_19, %c16, %c0_20] : memref<2x32x32xbf16, #tpu.memory_space<vmem>>, vector<2x16x32xbf16>
    tpu.vector_store %arg17[%c0_19, %c16, %c0_20], %48 {strides = array<i32>} : memref<2x32x32xbf16, #tpu.memory_space<vmem>>, vector<2x16x32xbf16>,
    %c0_21 = arith.constant 0 : index
    %c0_22 = arith.constant 0 : index
    %c0_23 = arith.constant 0 : index
    %50 = vector.load %arg17[%c0_21, %c0_22, %c0_23] : memref<2x32x32xbf16, #tpu.memory_space<vmem>>, vector<2x32x32xbf16>
    %51 = vector.shape_cast %50 : vector<2x32x32xbf16> to vector<64x32xbf16>
    %c0_24 = arith.constant 0 : index
    %c0_25 = arith.constant 0 : index
    %52 = vector.load %arg5[%c0_24, %c0_25] : memref<32x32xbf16, #tpu.memory_space<vmem>>, vector<32x32xbf16>
    %cst_26 = arith.constant dense<0.000000e+00> : vector<32x32xf32>
    %53 = tpu.matmul %23, %52, %cst_26 {dimension_numbers = #tpu.dot_dimension_numbers<[1], [0], [0], [1], [0, 0, 1, 1], [], []>} : vector<32x32xbf16>, vector<32x32xbf16>, vector<32x32xf32> -> vector<32x32xf32>
    %54 = arith.truncf %53 : vector<32x32xf32> to vector<32x32xbf16>
    %c0_27 = arith.constant 0 : index
    %c0_28 = arith.constant 0 : index
    %55 = vector.load %arg6[%c0_27, %c0_28] : memref<32x32xbf16, #tpu.memory_space<vmem>>, vector<32x32xbf16>
    %cst_29 = arith.constant dense<0.000000e+00> : vector<64x32xf32>
    %56 = tpu.matmul %51, %55, %cst_29 {dimension_numbers = #tpu.dot_dimension_numbers<[1], [0], [0], [1], [0, 0, 1, 1], [], []>} : vector<64x32xbf16>, vector<32x32xbf16>, vector<64x32xf32> -> vector<64x32xf32>
    %57 = arith.truncf %56 : vector<64x32xf32> to vector<64x32xbf16>
    %c0_30 = arith.constant 0 : index
    %c0_31 = arith.constant 0 : index
    %58 = vector.load %arg7[%c0_30, %c0_31] : memref<32x32xbf16, #tpu.memory_space<vmem>>, vector<32x32xbf16>
    %cst_32 = arith.constant dense<0.000000e+00> : vector<64x32xf32>
    %59 = tpu.matmul %51, %58, %cst_32 {dimension_numbers = #tpu.dot_dimension_numbers<[1], [0], [0], [1], [0, 0, 1, 1], [], []>} : vector<64x32xbf16>, vector<32x32xbf16>, vector<64x32xf32> -> vector<64x32xf32>
    %60 = arith.truncf %59 : vector<64x32xf32> to vector<64x32xbf16>
    %61 = vector.extract_strided_slice %54 {offsets = [0, 0], sizes = [32, 8], strides = [1, 1]} : vector<32x32xbf16> to vector<32x8xbf16>
    %62 = vector.shape_cast %61 : vector<32x8xbf16> to vector<2x16x8xbf16>
    %63 = vector.extract_strided_slice %57 {offsets = [0, 0], sizes = [64, 8], strides = [1, 1]} : vector<64x32xbf16> to vector<64x8xbf16>
    %64 = vector.shape_cast %63 : vector<64x8xbf16> to vector<2x32x8xbf16>
    %65 = vector.extract_strided_slice %60 {offsets = [0, 0], sizes = [64, 8], strides = [1, 1]} : vector<64x32xbf16> to vector<64x8xbf16>
    %66 = vector.shape_cast %65 : vector<64x8xbf16> to vector<2x32x8xbf16>
    "tpu.trace_start"() <{level = 10 : i32, message = "bqd,bkd->bqk"}> : () -> ()
    %cst_33 = arith.constant dense<0.000000e+00> : vector<2x16x32xf32>
    %67 = tpu.matmul %62, %64, %cst_33 {dimension_numbers = #tpu.dot_dimension_numbers<[2], [2], [1], [1], [0, 0, 0, 1, 1, 1], [0], [0]>} : vector<2x16x8xbf16>, vector<2x32x8xbf16>, vector<2x16x32xf32> -> vector<2x16x32xf32>
    "tpu.trace_stop"() : () -> ()
    %cst_34 = arith.constant dense<0xFF800000> : vector<2x16xf32>
    %68 = vector.multi_reduction <maximumf>, %67, %cst_34 [2] : vector<2x16x32xf32> to vector<2x16xf32>
    %69 = vector.shape_cast %68 : vector<2x16xf32> to vector<2x16x1xf32>
    %70 = vector.broadcast %69 : vector<2x16x1xf32> to vector<2x16x32xf32>
    %71 = arith.subf %67, %70 : vector<2x16x32xf32>
    %72 = math.exp %71 : vector<2x16x32xf32>
    %cst_35 = arith.constant dense<0.000000e+00> : vector<2x16xf32>
    %73 = vector.multi_reduction <add>, %72, %cst_35 [2] : vector<2x16x32xf32> to vector<2x16xf32>
    %74 = vector.shape_cast %73 : vector<2x16xf32> to vector<2x16x1xf32>
    %75 = tpu.reciprocal %74 {approx = true} : vector<2x16x1xf32> -> vector<2x16x1xf32>
    %76 = arith.truncf %72 : vector<2x16x32xf32> to vector<2x16x32xbf16>
    "tpu.trace_start"() <{level = 10 : i32, message = "bqk,bkd->bqd"}> : () -> ()
    %cst_36 = arith.constant dense<0.000000e+00> : vector<2x16x8xf32>
    %77 = tpu.matmul %76, %66, %cst_36 {dimension_numbers = #tpu.dot_dimension_numbers<[2], [1], [1], [2], [0, 0, 0, 1, 1, 2], [0], [0]>} : vector<2x16x32xbf16>, vector<2x32x8xbf16>, vector<2x16x8xf32> -> vector<2x16x8xf32>
    "tpu.trace_stop"() : () -> ()
    %78 = vector.broadcast %75 : vector<2x16x1xf32> to vector<2x16x8xf32>
    %79 = arith.mulf %77, %78 : vector<2x16x8xf32>
    %80 = vector.extract_strided_slice %54 {offsets = [0, 8], sizes = [32, 8], strides = [1, 1]} : vector<32x32xbf16> to vector<32x8xbf16>
    %81 = vector.shape_cast %80 : vector<32x8xbf16> to vector<2x16x8xbf16>
    %82 = vector.extract_strided_slice %57 {offsets = [0, 8], sizes = [64, 8], strides = [1, 1]} : vector<64x32xbf16> to vector<64x8xbf16>
    %83 = vector.shape_cast %82 : vector<64x8xbf16> to vector<2x32x8xbf16>
    %84 = vector.extract_strided_slice %60 {offsets = [0, 8], sizes = [64, 8], strides = [1, 1]} : vector<64x32xbf16> to vector<64x8xbf16>
    %85 = vector.shape_cast %84 : vector<64x8xbf16> to vector<2x32x8xbf16>
    "tpu.trace_start"() <{level = 10 : i32, message = "bqd,bkd->bqk"}> : () -> ()
    %cst_37 = arith.constant dense<0.000000e+00> : vector<2x16x32xf32>
    %86 = tpu.matmul %81, %83, %cst_37 {dimension_numbers = #tpu.dot_dimension_numbers<[2], [2], [1], [1], [0, 0, 0, 1, 1, 1], [0], [0]>} : vector<2x16x8xbf16>, vector<2x32x8xbf16>, vector<2x16x32xf32> -> vector<2x16x32xf32>
    "tpu.trace_stop"() : () -> ()
    %cst_38 = arith.constant dense<0xFF800000> : vector<2x16xf32>
    %87 = vector.multi_reduction <maximumf>, %86, %cst_38 [2] : vector<2x16x32xf32> to vector<2x16xf32>
    %88 = vector.shape_cast %87 : vector<2x16xf32> to vector<2x16x1xf32>
    %89 = vector.broadcast %88 : vector<2x16x1xf32> to vector<2x16x32xf32>
    %90 = arith.subf %86, %89 : vector<2x16x32xf32>
    %91 = math.exp %90 : vector<2x16x32xf32>
    %cst_39 = arith.constant dense<0.000000e+00> : vector<2x16xf32>
    %92 = vector.multi_reduction <add>, %91, %cst_39 [2] : vector<2x16x32xf32> to vector<2x16xf32>
    %93 = vector.shape_cast %92 : vector<2x16xf32> to vector<2x16x1xf32>
    %94 = tpu.reciprocal %93 {approx = true} : vector<2x16x1xf32> -> vector<2x16x1xf32>
    %95 = arith.truncf %91 : vector<2x16x32xf32> to vector<2x16x32xbf16>
    "tpu.trace_start"() <{level = 10 : i32, message = "bqk,bkd->bqd"}> : () -> ()
    %cst_40 = arith.constant dense<0.000000e+00> : vector<2x16x8xf32>
    %96 = tpu.matmul %95, %85, %cst_40 {dimension_numbers = #tpu.dot_dimension_numbers<[2], [1], [1], [2], [0, 0, 0, 1, 1, 2], [0], [0]>} : vector<2x16x32xbf16>, vector<2x32x8xbf16>, vector<2x16x8xf32> -> vector<2x16x8xf32>
    "tpu.trace_stop"() : () -> ()
    %97 = vector.broadcast %94 : vector<2x16x1xf32> to vector<2x16x8xf32>
    %98 = arith.mulf %96, %97 : vector<2x16x8xf32>
    %99 = vector.extract_strided_slice %54 {offsets = [0, 16], sizes = [32, 8], strides = [1, 1]} : vector<32x32xbf16> to vector<32x8xbf16>
    %100 = vector.shape_cast %99 : vector<32x8xbf16> to vector<2x16x8xbf16>
    %101 = vector.extract_strided_slice %57 {offsets = [0, 16], sizes = [64, 8], strides = [1, 1]} : vector<64x32xbf16> to vector<64x8xbf16>
    %102 = vector.shape_cast %101 : vector<64x8xbf16> to vector<2x32x8xbf16>
    %103 = vector.extract_strided_slice %60 {offsets = [0, 16], sizes = [64, 8], strides = [1, 1]} : vector<64x32xbf16> to vector<64x8xbf16>
    %104 = vector.shape_cast %103 : vector<64x8xbf16> to vector<2x32x8xbf16>
    "tpu.trace_start"() <{level = 10 : i32, message = "bqd,bkd->bqk"}> : () -> ()
    %cst_41 = arith.constant dense<0.000000e+00> : vector<2x16x32xf32>
    %105 = tpu.matmul %100, %102, %cst_41 {dimension_numbers = #tpu.dot_dimension_numbers<[2], [2], [1], [1], [0, 0, 0, 1, 1, 1], [0], [0]>} : vector<2x16x8xbf16>, vector<2x32x8xbf16>, vector<2x16x32xf32> -> vector<2x16x32xf32>
    "tpu.trace_stop"() : () -> ()
    %cst_42 = arith.constant dense<0xFF800000> : vector<2x16xf32>
    %106 = vector.multi_reduction <maximumf>, %105, %cst_42 [2] : vector<2x16x32xf32> to vector<2x16xf32>
    %107 = vector.shape_cast %106 : vector<2x16xf32> to vector<2x16x1xf32>
    %108 = vector.broadcast %107 : vector<2x16x1xf32> to vector<2x16x32xf32>
    %109 = arith.subf %105, %108 : vector<2x16x32xf32>
    %110 = math.exp %109 : vector<2x16x32xf32>
    %cst_43 = arith.constant dense<0.000000e+00> : vector<2x16xf32>
    %111 = vector.multi_reduction <add>, %110, %cst_43 [2] : vector<2x16x32xf32> to vector<2x16xf32>
    %112 = vector.shape_cast %111 : vector<2x16xf32> to vector<2x16x1xf32>
    %113 = tpu.reciprocal %112 {approx = true} : vector<2x16x1xf32> -> vector<2x16x1xf32>
    %114 = arith.truncf %110 : vector<2x16x32xf32> to vector<2x16x32xbf16>
    "tpu.trace_start"() <{level = 10 : i32, message = "bqk,bkd->bqd"}> : () -> ()
    %cst_44 = arith.constant dense<0.000000e+00> : vector<2x16x8xf32>
    %115 = tpu.matmul %114, %104, %cst_44 {dimension_numbers = #tpu.dot_dimension_numbers<[2], [1], [1], [2], [0, 0, 0, 1, 1, 2], [0], [0]>} : vector<2x16x32xbf16>, vector<2x32x8xbf16>, vector<2x16x8xf32> -> vector<2x16x8xf32>
    "tpu.trace_stop"() : () -> ()
    %116 = vector.broadcast %113 : vector<2x16x1xf32> to vector<2x16x8xf32>
    %117 = arith.mulf %115, %116 : vector<2x16x8xf32>
    %118 = vector.extract_strided_slice %54 {offsets = [0, 24], sizes = [32, 8], strides = [1, 1]} : vector<32x32xbf16> to vector<32x8xbf16>
    %119 = vector.shape_cast %118 : vector<32x8xbf16> to vector<2x16x8xbf16>
    %120 = vector.extract_strided_slice %57 {offsets = [0, 24], sizes = [64, 8], strides = [1, 1]} : vector<64x32xbf16> to vector<64x8xbf16>
    %121 = vector.shape_cast %120 : vector<64x8xbf16> to vector<2x32x8xbf16>
    %122 = vector.extract_strided_slice %60 {offsets = [0, 24], sizes = [64, 8], strides = [1, 1]} : vector<64x32xbf16> to vector<64x8xbf16>
    %123 = vector.shape_cast %122 : vector<64x8xbf16> to vector<2x32x8xbf16>
    "tpu.trace_start"() <{level = 10 : i32, message = "bqd,bkd->bqk"}> : () -> ()
    %cst_45 = arith.constant dense<0.000000e+00> : vector<2x16x32xf32>
    %124 = tpu.matmul %119, %121, %cst_45 {dimension_numbers = #tpu.dot_dimension_numbers<[2], [2], [1], [1], [0, 0, 0, 1, 1, 1], [0], [0]>} : vector<2x16x8xbf16>, vector<2x32x8xbf16>, vector<2x16x32xf32> -> vector<2x16x32xf32>
    "tpu.trace_stop"() : () -> ()
    %cst_46 = arith.constant dense<0xFF800000> : vector<2x16xf32>
    %125 = vector.multi_reduction <maximumf>, %124, %cst_46 [2] : vector<2x16x32xf32> to vector<2x16xf32>
    %126 = vector.shape_cast %125 : vector<2x16xf32> to vector<2x16x1xf32>
    %127 = vector.broadcast %126 : vector<2x16x1xf32> to vector<2x16x32xf32>
    %128 = arith.subf %124, %127 : vector<2x16x32xf32>
    %129 = math.exp %128 : vector<2x16x32xf32>
    %cst_47 = arith.constant dense<0.000000e+00> : vector<2x16xf32>
    %130 = vector.multi_reduction <add>, %129, %cst_47 [2] : vector<2x16x32xf32> to vector<2x16xf32>
    %131 = vector.shape_cast %130 : vector<2x16xf32> to vector<2x16x1xf32>
    %132 = tpu.reciprocal %131 {approx = true} : vector<2x16x1xf32> -> vector<2x16x1xf32>
    %133 = arith.truncf %129 : vector<2x16x32xf32> to vector<2x16x32xbf16>
    "tpu.trace_start"() <{level = 10 : i32, message = "bqk,bkd->bqd"}> : () -> ()
    %cst_48 = arith.constant dense<0.000000e+00> : vector<2x16x8xf32>
    %134 = tpu.matmul %133, %123, %cst_48 {dimension_numbers = #tpu.dot_dimension_numbers<[2], [1], [1], [2], [0, 0, 0, 1, 1, 2], [0], [0]>} : vector<2x16x32xbf16>, vector<2x32x8xbf16>, vector<2x16x8xf32> -> vector<2x16x8xf32>
    "tpu.trace_stop"() : () -> ()
    %135 = vector.broadcast %132 : vector<2x16x1xf32> to vector<2x16x8xf32>
    %136 = arith.mulf %134, %135 : vector<2x16x8xf32>
    %137 = tpu.concatenate %79, %98, %117, %136 in 2 : vector<2x16x8xf32>, vector<2x16x8xf32>, vector<2x16x8xf32>, vector<2x16x8xf32> -> vector<2x16x32xf32>
    %138 = vector.shape_cast %137 : vector<2x16x32xf32> to vector<32x32xf32>
    %139 = arith.truncf %138 : vector<32x32xf32> to vector<32x32xbf16>
    %c0_49 = arith.constant 0 : index
    %c0_50 = arith.constant 0 : index
    %140 = vector.load %arg8[%c0_49, %c0_50] : memref<32x32xbf16, #tpu.memory_space<vmem>>, vector<32x32xbf16>
    %cst_51 = arith.constant dense<0.000000e+00> : vector<32x32xf32>
    %141 = tpu.matmul %139, %140, %cst_51 {dimension_numbers = #tpu.dot_dimension_numbers<[1], [0], [0], [1], [0, 0, 1, 1], [], []>} : vector<32x32xbf16>, vector<32x32xbf16>, vector<32x32xf32> -> vector<32x32xf32>
    %c0_52 = arith.constant 0 : index
    %c0_53 = arith.constant 0 : index
    %142 = vector.load %arg9[%c0_52, %c0_53] : memref<1x32xf32, #tpu.memory_space<vmem>>, vector<1x32xf32>
    %143 = vector.broadcast %142 : vector<1x32xf32> to vector<32x32xf32>
    %144 = arith.addf %141, %143 : vector<32x32xf32>
    %c0_54 = arith.constant 0 : index
    %c0_55 = arith.constant 0 : index
    %145 = vector.load %arg1[%c0_54, %c0_55] : memref<32x32xf32, #tpu.memory_space<vmem>>, vector<32x32xf32>
    %146 = arith.addf %145, %144 : vector<32x32xf32>
    %c0_56 = arith.constant 0 : index
    %c0_57 = arith.constant 0 : index
    %147 = vector.load %arg10[%c0_56, %c0_57] : memref<1x32xf32, #tpu.memory_space<vmem>>, vector<1x32xf32>
    %c0_58 = arith.constant 0 : index
    %c0_59 = arith.constant 0 : index
    %148 = vector.load %arg11[%c0_58, %c0_59] : memref<1x32xf32, #tpu.memory_space<vmem>>, vector<1x32xf32>
    %cst_60 = arith.constant dense<0.000000e+00> : vector<32xf32>
    %149 = vector.multi_reduction <add>, %146, %cst_60 [1] : vector<32x32xf32> to vector<32xf32>
    %150 = vector.shape_cast %149 : vector<32xf32> to vector<32x1xf32>
    %cst_61 = arith.constant 3.200000e+01 : f32
    %151 = vector.broadcast %cst_61 : f32 to vector<32x1xf32>
    %152 = arith.divf %150, %151 : vector<32x1xf32>
    %153 = vector.broadcast %152 : vector<32x1xf32> to vector<32x32xf32>
    %154 = arith.subf %146, %153 : vector<32x32xf32>
    %155 = arith.mulf %154, %154 : vector<32x32xf32>
    %cst_62 = arith.constant dense<0.000000e+00> : vector<32xf32>
    %156 = vector.multi_reduction <add>, %155, %cst_62 [1] : vector<32x32xf32> to vector<32xf32>
    %157 = vector.shape_cast %156 : vector<32xf32> to vector<32x1xf32>
    %cst_63 = arith.constant 3.200000e+01 : f32
    %158 = vector.broadcast %cst_63 : f32 to vector<32x1xf32>
    %159 = arith.divf %157, %158 : vector<32x1xf32>
    %cst_64 = arith.constant 9.99999974E-6 : f32
    %160 = vector.broadcast %cst_64 : f32 to vector<32x1xf32>
    %161 = arith.addf %159, %160 : vector<32x1xf32>
    %162 = math.rsqrt %161 : vector<32x1xf32>
    %163 = vector.broadcast %162 : vector<32x1xf32> to vector<32x32xf32>
    %164 = arith.mulf %154, %163 : vector<32x32xf32>
    %165 = vector.broadcast %147 : vector<1x32xf32> to vector<32x32xf32>
    %166 = arith.mulf %164, %165 : vector<32x32xf32>
    %167 = vector.broadcast %148 : vector<1x32xf32> to vector<32x32xf32>
    %168 = arith.addf %166, %167 : vector<32x32xf32>
    %169 = arith.truncf %168 : vector<32x32xf32> to vector<32x32xbf16>
    %c0_65 = arith.constant 0 : index
    %c0_66 = arith.constant 0 : index
    %170 = vector.load %arg12[%c0_65, %c0_66] : memref<32x128xbf16, #tpu.memory_space<vmem>>, vector<32x128xbf16>
    %cst_67 = arith.constant dense<0.000000e+00> : vector<32x128xf32>
    %171 = tpu.matmul %169, %170, %cst_67 {dimension_numbers = #tpu.dot_dimension_numbers<[1], [0], [0], [1], [0, 0, 1, 1], [], []>} : vector<32x32xbf16>, vector<32x128xbf16>, vector<32x128xf32> -> vector<32x128xf32>
    %c0_68 = arith.constant 0 : index
    %c0_69 = arith.constant 0 : index
    %172 = vector.load %arg13[%c0_68, %c0_69] : memref<1x128xf32, #tpu.memory_space<vmem>>, vector<1x128xf32>
    %173 = vector.broadcast %172 : vector<1x128xf32> to vector<32x128xf32>
    %174 = arith.addf %171, %173 : vector<32x128xf32>
    %cst_70 = arith.constant 5.000000e-01 : f32
    %175 = vector.broadcast %cst_70 : f32 to vector<32x128xf32>
    %176 = arith.mulf %175, %174 : vector<32x128xf32>
    %cst_71 = arith.constant 0.707106769 : f32
    %177 = vector.broadcast %cst_71 : f32 to vector<32x128xf32>
    %178 = arith.mulf %174, %177 : vector<32x128xf32>
    %179 = math.erf %178 : vector<32x128xf32>
    %cst_72 = arith.constant 1.000000e+00 : f32
    %180 = vector.broadcast %cst_72 : f32 to vector<32x128xf32>
    %181 = arith.addf %180, %179 : vector<32x128xf32>
    %182 = arith.mulf %176, %181 : vector<32x128xf32>
    %183 = arith.truncf %182 : vector<32x128xf32> to vector<32x128xbf16>
    %c0_73 = arith.constant 0 : index
    %c0_74 = arith.constant 0 : index
    %184 = vector.load %arg14[%c0_73, %c0_74] : memref<128x32xbf16, #tpu.memory_space<vmem>>, vector<128x32xbf16>
    %cst_75 = arith.constant dense<0.000000e+00> : vector<32x32xf32>
    %185 = tpu.matmul %183, %184, %cst_75 {dimension_numbers = #tpu.dot_dimension_numbers<[1], [0], [0], [1], [0, 0, 1, 1], [], []>} : vector<32x128xbf16>, vector<128x32xbf16>, vector<32x32xf32> -> vector<32x32xf32>
    %c0_76 = arith.constant 0 : index
    %c0_77 = arith.constant 0 : index
    %186 = vector.load %arg15[%c0_76, %c0_77] : memref<1x32xf32, #tpu.memory_space<vmem>>, vector<1x32xf32>
    %187 = vector.broadcast %186 : vector<1x32xf32> to vector<32x32xf32>
    %188 = arith.addf %185, %187 : vector<32x32xf32>
    %189 = arith.addf %146, %188 : vector<32x32xf32>
    %c0_78 = arith.constant 0 : index
    %c0_79 = arith.constant 0 : index
    %190 = vector.load %arg16[%c0_78, %c0_79] : memref<32x32xf32, #tpu.memory_space<vmem>>, vector<32x32xf32>
    tpu.vector_store %arg16[%c0_78, %c0_79], %189 {strides = array<i32>} : memref<32x32xf32, #tpu.memory_space<vmem>>, vector<32x32xf32>,
    return
  }
  func.func @transform_0(%arg0: i32) -> (i32, i32) {
    %c0_i32 = arith.constant 0 : i32
    %c0_i32_0 = arith.constant 0 : i32
    return %arg0, %c0_i32 : i32, i32
  }
  func.func @transform_1(%arg0: i32) -> (i32, i32) {
    %c0_i32 = arith.constant 0 : i32
    %c0_i32_0 = arith.constant 0 : i32
    return %arg0, %c0_i32 : i32, i32
  }
  func.func @transform_2(%arg0: i32) -> (i32, i32) {
    %c0_i32 = arith.constant 0 : i32
    %c0_i32_0 = arith.constant 0 : i32
    %c0_i32_1 = arith.constant 0 : i32
    return %c0_i32, %c0_i32_0 : i32, i32
  }
  func.func @transform_3(%arg0: i32) -> (i32, i32) {
    %c0_i32 = arith.constant 0 : i32
    %c0_i32_0 = arith.constant 0 : i32
    %c0_i32_1 = arith.constant 0 : i32
    return %c0_i32, %c0_i32_0 : i32, i32
  }
  func.func @transform_4(%arg0: i32) -> (i32, i32) {
    %c0_i32 = arith.constant 0 : i32
    %c0_i32_0 = arith.constant 0 : i32
    %c0_i32_1 = arith.constant 0 : i32
    return %c0_i32, %c0_i32_0 : i32, i32
  }
  func.func @transform_5(%arg0: i32) -> (i32, i32) {
    %c0_i32 = arith.constant 0 : i32
    %c0_i32_0 = arith.constant 0 : i32
    %c0_i32_1 = arith.constant 0 : i32
    return %c0_i32, %c0_i32_0 : i32, i32
  }
  func.func @transform_6(%arg0: i32) -> (i32, i32) {
    %c0_i32 = arith.constant 0 : i32
    %c0_i32_0 = arith.constant 0 : i32
    %c0_i32_1 = arith.constant 0 : i32
    return %c0_i32, %c0_i32_0 : i32, i32
  }
  func.func @transform_7(%arg0: i32) -> (i32, i32) {
    %c0_i32 = arith.constant 0 : i32
    %c0_i32_0 = arith.constant 0 : i32
    %c0_i32_1 = arith.constant 0 : i32
    return %c0_i32, %c0_i32_0 : i32, i32
  }
  func.func @transform_8(%arg0: i32) -> (i32, i32) {
    %c0_i32 = arith.constant 0 : i32
    %c0_i32_0 = arith.constant 0 : i32
    %c0_i32_1 = arith.constant 0 : i32
    return %c0_i32, %c0_i32_0 : i32, i32
  }
  func.func @transform_9(%arg0: i32) -> (i32, i32) {
    %c0_i32 = arith.constant 0 : i32
    %c0_i32_0 = arith.constant 0 : i32
    %c0_i32_1 = arith.constant 0 : i32
    return %c0_i32, %c0_i32_0 : i32, i32
  }
  func.func @transform_10(%arg0: i32) -> (i32, i32) {
    %c0_i32 = arith.constant 0 : i32
    %c0_i32_0 = arith.constant 0 : i32
    %c0_i32_1 = arith.constant 0 : i32
    return %c0_i32, %c0_i32_0 : i32, i32
  }
  func.func @transform_11(%arg0: i32) -> (i32, i32) {
    %c0_i32 = arith.constant 0 : i32
    %c0_i32_0 = arith.constant 0 : i32
    %c0_i32_1 = arith.constant 0 : i32
    return %c0_i32, %c0_i32_0 : i32, i32
  }
  func.func @transform_12(%arg0: i32) -> (i32, i32) {
    %c0_i32 = arith.constant 0 : i32
    %c0_i32_0 = arith.constant 0 : i32
    %c0_i32_1 = arith.constant 0 : i32
    return %c0_i32, %c0_i32_0 : i32, i32
  }
  func.func @transform_13(%arg0: i32) -> (i32, i32) {
    %c0_i32 = arith.constant 0 : i32
    %c0_i32_0 = arith.constant 0 : i32
    %c0_i32_1 = arith.constant 0 : i32
    return %c0_i32, %c0_i32_0 : i32, i32
  }
  func.func @transform_14(%arg0: i32) -> (i32, i32) {
    %c0_i32 = arith.constant 0 : i32
    %c0_i32_0 = arith.constant 0 : i32
    %c0_i32_1 = arith.constant 0 : i32
    return %c0_i32, %c0_i32_0 : i32, i32
  }
  func.func @transform_15(%arg0: i32) -> (i32, i32) {
    %c0_i32 = arith.constant 0 : i32
    %c0_i32_0 = arith.constant 0 : i32
    return %arg0, %c0_i32 : i32, i32
  }
}

</mosaic_0001>

<bundles_post_ra>
// kernel: tpu_custom_call.1
= control target key start
LH: loop header
LB: loop body
LE: loop exit
PB: predicated region body
PF: predicated region fallthrough
CT: control target
= control target key end

     0   :  { %20 = vsyncpa [#allocation4], 0  ;;  %s3787_s0 = inlined_call_operand.hbm [shape: f32[32,32], index: 0, kind: input, shape index: {}]   ;;  %s3788_s1 = inlined_call_operand.hbm [shape: f32[32,32], index: 1, kind: input, shape index: {}]   ;;  %s3789_s2 = inlined_call_operand.hbm [shape: f32[1,32], index: 2, kind: input, shape index: {}]   ;;  %s3790_s3 = inlined_call_operand.hbm [shape: f32[1,32], index: 3, kind: input, shape index: {}]   ;;  %s3791_s4 = inlined_call_operand.hbm [shape: bf16[32,32], index: 4, kind: input, shape index: {}]   ;;  %s3792_s5 = inlined_call_operand.hbm [shape: bf16[32,32], index: 5, kind: input, shape index: {}]   ;;  %s3793_s6 = inlined_call_operand.hbm [shape: bf16[32,32], index: 6, kind: input, shape index: {}]   ;;  %s3794_s7 = inlined_call_operand.hbm [shape: bf16[32,32], index: 7, kind: input, shape index: {}]   ;;  %s3795_s8 = inlined_call_operand.hbm [shape: f32[1,32], index: 8, kind: input, shape index: {}]   ;;  %s3796_s9 = inlined_call_operand.hbm [shape: f32[1,32], index: 9, kind: input, shape index: {}]   ;;  %s3797_s10 = inlined_call_operand.hbm [shape: f32[1,32], index: 10, kind: input, shape index: {}]   ;;  %s3798_s11 = inlined_call_operand.hbm [shape: bf16[32,128], index: 11, kind: input, shape index: {}]   ;;  %s3799_s12 = inlined_call_operand.hbm [shape: f32[1,128], index: 12, kind: input, shape index: {}]   ;;  %s3800_s13 = inlined_call_operand.hbm [shape: bf16[128,32], index: 13, kind: input, shape index: {}]   ;;  %s3801_s14 = inlined_call_operand.hbm [shape: f32[1,32], index: 14, kind: input, shape index: {}]   ;;  %s3802_s15 = inlined_call_operand.hbm [shape: f32[32,32], index: 15, kind: output, shape index: {}]  }
   0x1   :  { %21 = vsyncpa [#allocation7], 0 }
   0x2   :  { %22 = vsyncpa [#allocation10], 0 }
   0x3   :  { %23 = vsyncpa [#allocation13], 0 }
   0x4   :  { %24 = vsyncpa [#allocation16], 0 }
   0x5   :  { %25 = vsyncpa [#allocation19], 0 }
   0x6   :  { %26 = vsyncpa [#allocation22], 0 }
   0x7   :  { %27 = vsyncpa [#allocation25], 0 }
   0x8   :  { %28 = vsyncpa [#allocation5], 0  ;;  %s3023_s18 = smov [#allocation6]   ;;  %s3024_s20 = smov [#allocation9]  }
   0x9   :  { %s46_s19 = sshll.u32 %s3023_s18, 4  ;;  %s69_s21 = sshll.u32 %s3024_s20, 4  ;;  %s47_s19 = int_to_ptr.vmem [resolvable:$true] %s46_s19  ;;  %s3130_s21 = int_to_ptr.vmem [resolvable:$true] %s69_s21 }
   0xa   :  { %s2653_s24 = scalar_lea.hbm %s3788_s1, 512 }
   0xb   :  { %p2654_p0 = scmp.ne.s32.totalorder %s3788_s1, %s2653_s24  ;;  %p2657_p1 = scmp.lt.u32.totalorder %s2653_s24, %s3788_s1 }
   0xd   :  { %p2659_p2 = pnand %p2657_p1, %p2654_p0 }
   0xf   :  { %2662 = shalt.err (!%p2659_p2)
}
  0x10   :  { %s2663_s29 = scalar_lea.vmem %s47_s19, 512  ;;  %p2668_p4 = scmp.lt.s32.totalorder %s47_s19, %s47_s19 }
  0x11   :  { %p2664_p3 = scmp.ne.s32.totalorder %s47_s19, %s2663_s29  ;;  %p2669_p5 = scmp.lt.s32.totalorder %s2663_s29, %s2663_s29 }
  0x13   :  { %p2670_p6 = por %p2669_p5, %p2668_p4 }
  0x15   :  { %p2671_p7 = pnand %p2670_p6, %p2664_p3 }
  0x17   :  { %2674 = shalt.err (!%p2671_p7)
}
  0x18   :  { %s3025_s30 = smov 128   ;;  %s3026_s16 = smov 8  }
  0x19   :  { %52 = dma.hbm_to_vmem [thread:$0]  %s3788_s1, 512, %s47_s19, [#allocation7], %s3025_s30, %s3025_s30, %s3026_s16  }
  0x1a   :  { %s2675_s23 = scalar_lea.hbm %s3790_s3, 16 }
  0x1b   :  { %p2676_p8 = scmp.ne.s32.totalorder %s3790_s3, %s2675_s23  ;;  %p2679_p9 = scmp.lt.u32.totalorder %s2675_s23, %s3790_s3 }
  0x1d   :  { %p2681_p10 = pnand %p2679_p9, %p2676_p8 }
  0x1f   :  { %2684 = shalt.err (!%p2681_p10)
}
  0x20   :  { %s2685_s28 = scalar_lea.vmem %s3130_s21, 16  ;;  %s2689_s1 = scalar_lea.vmem %s3130_s21, 32 }
  0x21   :  { %p2686_p11 = scmp.ne.s32.totalorder %s3130_s21, %s2685_s28  ;;  %p2690_p12 = scmp.lt.s32.totalorder %s3130_s21, %s3130_s21 }
  0x22   :  { %p2691_p13 = scmp.lt.s32.totalorder %s2689_s1, %s2685_s28 }
  0x24   :  { %p2692_p0 = por %p2691_p13, %p2690_p12 }
  0x26   :  { %p2693_p1 = pnand %p2692_p0, %p2686_p11 }
  0x28   :  { %2696 = shalt.err (!%p2693_p1)
}
  0x29   :  { %72 = dma.hbm_to_vmem [thread:$0]  %s3790_s3, 16, %s3130_s21, [#allocation10]  }
  0x2a   :  { %s3027_s17 = smov [#allocation12]   ;;  %s3028_s20 = smov [#allocation15]  }
  0x2b   :  { %s90_s18 = sshll.u32 %s3027_s17, 4  ;;  %s114_s22 = sshll.u32 %s3028_s20, 4  ;;  %s91_s18 = int_to_ptr.vmem [resolvable:$true] %s90_s18  ;;  %s3165_s22 = int_to_ptr.vmem [resolvable:$true] %s114_s22 }
  0x2c   :  { %s2697_s25 = scalar_lea.hbm %s3792_s5, 256 }
  0x2d   :  { %p2698_p2 = scmp.ne.s32.totalorder %s3792_s5, %s2697_s25  ;;  %p2701_p3 = scmp.lt.u32.totalorder %s2697_s25, %s3792_s5 }
  0x2f   :  { %p2703_p4 = pnand %p2701_p3, %p2698_p2 }
  0x31   :  { %2706 = shalt.err (!%p2703_p4)
}
  0x32   :  { %s2707_s3 = scalar_lea.vmem %s91_s18, 256  ;;  %p2712_p6 = scmp.lt.s32.totalorder %s91_s18, %s91_s18 }
  0x33   :  { %p2708_p5 = scmp.ne.s32.totalorder %s91_s18, %s2707_s3  ;;  %p2713_p7 = scmp.lt.s32.totalorder %s2707_s3, %s2707_s3 }
  0x35   :  { %p2714_p8 = por %p2713_p7, %p2712_p6 }
  0x37   :  { %p2715_p9 = pnand %p2714_p8, %p2708_p5 }
  0x39   :  { %2718 = shalt.err (!%p2715_p9)
}
  0x3a   :  { %s3029_s21 = smov 64   ;;  %s3030_s19 = smov 4  }
  0x3b   :  { %96 = dma.hbm_to_vmem [thread:$0]  %s3792_s5, 256, %s91_s18, [#allocation13], %s3029_s21, %s3029_s21, %s3030_s19  }
  0x3c   :  { %s2719_s24 = scalar_lea.hbm %s3794_s7, 256 }
  0x3d   :  { %p2720_p10 = scmp.ne.s32.totalorder %s3794_s7, %s2719_s24  ;;  %p2723_p11 = scmp.lt.u32.totalorder %s2719_s24, %s3794_s7 }
  0x3f   :  { %p2725_p12 = pnand %p2723_p11, %p2720_p10 }
  0x41   :  { %2728 = shalt.err (!%p2725_p12)
}
  0x42   :  { %s2729_s1 = scalar_lea.vmem %s3165_s22, 256  ;;  %p2734_p0 = scmp.lt.s32.totalorder %s3165_s22, %s3165_s22 }
  0x43   :  { %p2730_p13 = scmp.ne.s32.totalorder %s3165_s22, %s2729_s1  ;;  %p2735_p1 = scmp.lt.s32.totalorder %s2729_s1, %s2729_s1 }
  0x45   :  { %p2736_p2 = por %p2735_p1, %p2734_p0 }
  0x47   :  { %p2737_p3 = pnand %p2736_p2, %p2730_p13 }
  0x49   :  { %2740 = shalt.err (!%p2737_p3)
}
  0x4a   :  { %120 = dma.hbm_to_vmem [thread:$0]  %s3794_s7, 256, %s3165_s22, [#allocation16], %s3029_s21, %s3029_s21, %s3030_s19  }
  0x4b   :  { %s3031_s3 = smov [#allocation18]   ;;  %s3032_s17 = smov [#allocation21]  }
  0x4c   :  { %s137_s29 = sshll.u32 %s3031_s3, 4  ;;  %s156_s20 = sshll.u32 %s3032_s17, 4  ;;  %s138_s29 = int_to_ptr.vmem [resolvable:$true] %s137_s29  ;;  %s3202_s20 = int_to_ptr.vmem [resolvable:$true] %s156_s20 }
  0x4d   :  { %s2741_s25 = scalar_lea.hbm %s3796_s9, 16 }
  0x4e   :  { %p2742_p4 = scmp.ne.s32.totalorder %s3796_s9, %s2741_s25  ;;  %p2745_p5 = scmp.lt.u32.totalorder %s2741_s25, %s3796_s9 }
  0x50   :  { %p2747_p6 = pnand %p2745_p5, %p2742_p4 }
  0x52   :  { %2750 = shalt.err (!%p2747_p6)
}
  0x53   :  { %s2751_s7 = scalar_lea.vmem %s138_s29, 16  ;;  %s2755_s22 = scalar_lea.vmem %s138_s29, 32 }
  0x54   :  { %p2752_p7 = scmp.ne.s32.totalorder %s138_s29, %s2751_s7  ;;  %p2756_p8 = scmp.lt.s32.totalorder %s138_s29, %s138_s29 }
  0x55   :  { %p2757_p9 = scmp.lt.s32.totalorder %s2755_s22, %s2751_s7 }
  0x57   :  { %p2758_p10 = por %p2757_p9, %p2756_p8 }
  0x59   :  { %p2759_p11 = pnand %p2758_p10, %p2752_p7 }
  0x5b   :  { %2762 = shalt.err (!%p2759_p11)
}
  0x5c   :  { %140 = dma.hbm_to_vmem [thread:$0]  %s3796_s9, 16, %s138_s29, [#allocation19]  }
  0x5d   :  { %s2763_s23 = scalar_lea.hbm %s3798_s11, 256 }
  0x5e   :  { %p2764_p12 = scmp.ne.s32.totalorder %s3798_s11, %s2763_s23  ;;  %p2767_p13 = scmp.lt.u32.totalorder %s2763_s23, %s3798_s11 }
  0x60   :  { %p2769_p0 = pnand %p2767_p13, %p2764_p12 }
  0x62   :  { %2772 = shalt.err (!%p2769_p0)
}
  0x63   :  { %s2773_s28 = scalar_lea.vmem %s3202_s20, 256  ;;  %p2778_p2 = scmp.lt.s32.totalorder %s3202_s20, %s3202_s20 }
  0x64   :  { %p2774_p1 = scmp.ne.s32.totalorder %s3202_s20, %s2773_s28  ;;  %p2779_p3 = scmp.lt.s32.totalorder %s2773_s28, %s2773_s28 }
  0x66   :  { %p2780_p4 = por %p2779_p3, %p2778_p2 }
  0x68   :  { %p2781_p5 = pnand %p2780_p4, %p2774_p1 }
  0x6a   :  { %2784 = shalt.err (!%p2781_p5)
}
  0x6b   :  { %162 = dma.hbm_to_vmem [thread:$0]  %s3798_s11, 256, %s3202_s20, [#allocation22], %s3029_s21, %s3029_s21, %s3030_s19  }
  0x6c   :  { %s3033_s1 = smov [#allocation24]   ;;  %s3034_s22 = smov [#allocation3]  }
  0x6d   :  { %s178_s7 = sshll.u32 %s3033_s1, 4  ;;  %s34_s5 = sshll.u32 %s3034_s22, 4  ;;  %s179_s7 = int_to_ptr.vmem [resolvable:$true] %s178_s7  ;;  %s3236_s5 = int_to_ptr.vmem [resolvable:$true] %s34_s5 }
  0x6e   :  { %s2785_s17 = scalar_lea.hbm %s3800_s13, 1024 }
  0x6f   :  { %p2786_p6 = scmp.ne.s32.totalorder %s3800_s13, %s2785_s17  ;;  %p2789_p7 = scmp.lt.u32.totalorder %s2785_s17, %s3800_s13 }
  0x71   :  { %p2791_p8 = pnand %p2789_p7, %p2786_p6 }
  0x73   :  { %2794 = shalt.err (!%p2791_p8)
}
  0x74   :  { %s2795_s11 = scalar_lea.vmem %s179_s7, 1024  ;;  %p2800_p10 = scmp.lt.s32.totalorder %s179_s7, %s179_s7 }
  0x75   :  { %p2796_p9 = scmp.ne.s32.totalorder %s179_s7, %s2795_s11  ;;  %p2801_p11 = scmp.lt.s32.totalorder %s2795_s11, %s2795_s11 }
  0x77   :  { %p2802_p12 = por %p2801_p11, %p2800_p10 }
  0x79   :  { %p2803_p13 = pnand %p2802_p12, %p2796_p9 }
  0x7b   :  { %2806 = shalt.err (!%p2803_p13)
}
  0x7c   :  { %184 = dma.hbm_to_vmem [thread:$0]  %s3800_s13, 1024, %s179_s7, [#allocation25], %s3029_s21, %s3029_s21, %s3030_s19  }
  0x7d   :  { %s2807_s29 = scalar_lea.hbm %s3787_s0, 512 }
  0x7e   :  { %p2808_p0 = scmp.ne.s32.totalorder %s3787_s0, %s2807_s29  ;;  %p2811_p1 = scmp.lt.u32.totalorder %s2807_s29, %s3787_s0 }
  0x80   :  { %p2813_p2 = pnand %p2811_p1, %p2808_p0 }
  0x82   :  { %2816 = shalt.err (!%p2813_p2)
}
  0x83   :  { %s2817_s17 = scalar_lea.vmem %s3236_s5, 512  ;;  %p2822_p4 = scmp.lt.s32.totalorder %s3236_s5, %s3236_s5 }
  0x84   :  { %p2818_p3 = scmp.ne.s32.totalorder %s3236_s5, %s2817_s17  ;;  %p2823_p5 = scmp.lt.s32.totalorder %s2817_s17, %s2817_s17 }
  0x86   :  { %p2824_p6 = por %p2823_p5, %p2822_p4 }
  0x88   :  { %p2825_p7 = pnand %p2824_p6, %p2818_p3 }
  0x8a   :  { %2828 = shalt.err (!%p2825_p7)
}
  0x8b   :  { %40 = dma.hbm_to_vmem [thread:$0]  %s3787_s0, 512, %s3236_s5, [#allocation4], %s3025_s30, %s3025_s30, %s3026_s16  }
  0x8c   :  { %s3035_s23 = smov [#allocation8]   ;;  %s3036_s25 = smov [#allocation11]  }
  0x8d   :  { %s59_s24 = sshll.u32 %s3035_s23, 4  ;;  %s78_s26 = sshll.u32 %s3036_s25, 4  ;;  %s60_s24 = int_to_ptr.vmem [resolvable:$true] %s59_s24  ;;  %s3273_s26 = int_to_ptr.vmem [resolvable:$true] %s78_s26 }
  0x8e   :  { %s2829_s27 = scalar_lea.hbm %s3789_s2, 16 }
  0x8f   :  { %p2830_p8 = scmp.ne.s32.totalorder %s3789_s2, %s2829_s27  ;;  %p2833_p9 = scmp.lt.u32.totalorder %s2829_s27, %s3789_s2 }
  0x91   :  { %p2835_p10 = pnand %p2833_p9, %p2830_p8 }
  0x93   :  { %2838 = shalt.err (!%p2835_p10)
}
  0x94   :  { %s2839_s0 = scalar_lea.vmem %s60_s24, 16  ;;  %s2843_s5 = scalar_lea.vmem %s60_s24, 32 }
  0x95   :  { %p2840_p11 = scmp.ne.s32.totalorder %s60_s24, %s2839_s0  ;;  %p2844_p12 = scmp.lt.s32.totalorder %s60_s24, %s60_s24 }
  0x96   :  { %p2845_p13 = scmp.lt.s32.totalorder %s2843_s5, %s2839_s0 }
  0x98   :  { %p2846_p0 = por %p2845_p13, %p2844_p12 }
  0x9a   :  { %p2847_p1 = pnand %p2846_p0, %p2840_p11 }
  0x9c   :  { %2850 = shalt.err (!%p2847_p1)
}
  0x9d   :  { %62 = dma.hbm_to_vmem [thread:$0]  %s3789_s2, 16, %s60_s24, [#allocation7]  }
  0x9e   :  { %s2851_s13 = scalar_lea.hbm %s3791_s4, 256 }
  0x9f   :  { %p2852_p2 = scmp.ne.s32.totalorder %s3791_s4, %s2851_s13  ;;  %p2855_p3 = scmp.lt.u32.totalorder %s2851_s13, %s3791_s4 }
  0xa1   :  { %p2857_p4 = pnand %p2855_p3, %p2852_p2 }
  0xa3   :  { %2860 = shalt.err (!%p2857_p4)
}
  0xa4   :  { %s2861_s20 = scalar_lea.vmem %s3273_s26, 256  ;;  %p2866_p6 = scmp.lt.s32.totalorder %s3273_s26, %s3273_s26 }
  0xa5   :  { %p2862_p5 = scmp.ne.s32.totalorder %s3273_s26, %s2861_s20  ;;  %p2867_p7 = scmp.lt.s32.totalorder %s2861_s20, %s2861_s20 }
  0xa7   :  { %p2868_p8 = por %p2867_p7, %p2866_p6 }
  0xa9   :  { %p2869_p9 = pnand %p2868_p8, %p2862_p5 }
  0xab   :  { %2872 = shalt.err (!%p2869_p9)
}
  0xac   :  { %84 = dma.hbm_to_vmem [thread:$0]  %s3791_s4, 256, %s3273_s26, [#allocation10], %s3029_s21, %s3029_s21, %s3030_s19  }
  0xad   :  { %s3037_s27 = smov [#allocation14]   ;;  %s3038_s9 = smov [#allocation17]  }
  0xae   :  { %s102_s28 = sshll.u32 %s3037_s27, 4  ;;  %s127_s29 = sshll.u32 %s3038_s9, 4  ;;  %s103_s28 = int_to_ptr.vmem [resolvable:$true] %s102_s28  ;;  %s128_s29 = int_to_ptr.vmem [resolvable:$true] %s127_s29 }
  0xaf   :  { %s2873_s5 = scalar_lea.hbm %s3793_s6, 256 }
  0xb0   :  { %p2874_p10 = scmp.ne.s32.totalorder %s3793_s6, %s2873_s5  ;;  %p2877_p11 = scmp.lt.u32.totalorder %s2873_s5, %s3793_s6 }
  0xb2   :  { %p2879_p12 = pnand %p2877_p11, %p2874_p10 }
  0xb4   :  { %2882 = shalt.err (!%p2879_p12)
}
  0xb5   :  { %s2883_s4 = scalar_lea.vmem %s103_s28, 256  ;;  %p2888_p0 = scmp.lt.s32.totalorder %s103_s28, %s103_s28 }
  0xb6   :  { %p2884_p13 = scmp.ne.s32.totalorder %s103_s28, %s2883_s4  ;;  %p2889_p1 = scmp.lt.s32.totalorder %s2883_s4, %s2883_s4 }
  0xb8   :  { %p2890_p2 = por %p2889_p1, %p2888_p0 }
  0xba   :  { %p2891_p3 = pnand %p2890_p2, %p2884_p13 }
  0xbc   :  { %2894 = shalt.err (!%p2891_p3)
}
  0xbd   :  { %108 = dma.hbm_to_vmem [thread:$0]  %s3793_s6, 256, %s103_s28, [#allocation13], %s3029_s21, %s3029_s21, %s3030_s19  }
  0xbe   :  { %s2895_s25 = scalar_lea.hbm %s3795_s8, 16 }
  0xbf   :  { %p2896_p4 = scmp.ne.s32.totalorder %s3795_s8, %s2895_s25  ;;  %p2899_p5 = scmp.lt.u32.totalorder %s2895_s25, %s3795_s8 }
  0xc1   :  { %p2901_p6 = pnand %p2899_p5, %p2896_p4 }
  0xc3   :  { %2904 = shalt.err (!%p2901_p6)
}
  0xc4   :  { %s2905_s27 = scalar_lea.vmem %s128_s29, 16  ;;  %s2909_s9 = scalar_lea.vmem %s128_s29, 32 }
  0xc5   :  { %p2906_p7 = scmp.ne.s32.totalorder %s128_s29, %s2905_s27  ;;  %p2910_p8 = scmp.lt.s32.totalorder %s128_s29, %s128_s29 }
  0xc6   :  { %p2911_p9 = scmp.lt.s32.totalorder %s2909_s9, %s2905_s27 }
  0xc8   :  { %p2912_p10 = por %p2911_p9, %p2910_p8 }
  0xca   :  { %p2913_p11 = pnand %p2912_p10, %p2906_p7 }
  0xcc   :  { %2916 = shalt.err (!%p2913_p11)
}
  0xcd   :  { %130 = dma.hbm_to_vmem [thread:$0]  %s3795_s8, 16, %s128_s29, [#allocation16]  }
  0xce   :  { %s3039_s19 = smov [#allocation20]   ;;  %s3040_s1 = smov [#allocation23]  }
  0xcf   :  { %s147_s28 = sshll.u32 %s3039_s19, 4  ;;  %s169_s0 = sshll.u32 %s3040_s1, 4  ;;  %s148_s28 = int_to_ptr.vmem [resolvable:$true] %s147_s28  ;;  %s170_s0 = int_to_ptr.vmem [resolvable:$true] %s169_s0 }
  0xd0   :  { %s2917_s18 = scalar_lea.hbm %s3797_s10, 16 }
  0xd1   :  { %p2918_p12 = scmp.ne.s32.totalorder %s3797_s10, %s2917_s18  ;;  %p2921_p13 = scmp.lt.u32.totalorder %s2917_s18, %s3797_s10 }
  0xd3   :  { %p2923_p0 = pnand %p2921_p13, %p2918_p12 }
  0xd5   :  { %2926 = shalt.err (!%p2923_p0)
}
  0xd6   :  { %s2927_s8 = scalar_lea.vmem %s148_s28, 16  ;;  %s2931_s29 = scalar_lea.vmem %s148_s28, 32 }
  0xd7   :  { %p2928_p1 = scmp.ne.s32.totalorder %s148_s28, %s2927_s8  ;;  %p2932_p2 = scmp.lt.s32.totalorder %s148_s28, %s148_s28 }
  0xd8   :  { %p2933_p3 = scmp.lt.s32.totalorder %s2931_s29, %s2927_s8 }
  0xda   :  { %p2934_p4 = por %p2933_p3, %p2932_p2 }
  0xdc   :  { %p2935_p5 = pnand %p2934_p4, %p2928_p1 }
  0xde   :  { %2938 = shalt.err (!%p2935_p5)
}
  0xdf   :  { %150 = dma.hbm_to_vmem [thread:$0]  %s3797_s10, 16, %s148_s28, [#allocation19]  }
  0xe0   :  { %s2939_s11 = scalar_lea.hbm %s3799_s12, 16 }
  0xe1   :  { %p2940_p6 = scmp.ne.s32.totalorder %s3799_s12, %s2939_s11  ;;  %p2943_p7 = scmp.lt.u32.totalorder %s2939_s11, %s3799_s12 }
  0xe3   :  { %p2945_p8 = pnand %p2943_p7, %p2940_p6 }
  0xe5   :  { %2948 = shalt.err (!%p2945_p8)
}
  0xe6   :  { %s2949_s9 = scalar_lea.vmem %s170_s0, 16  ;;  %s2953_s6 = scalar_lea.vmem %s170_s0, 32 }
  0xe7   :  { %p2950_p9 = scmp.ne.s32.totalorder %s170_s0, %s2949_s9  ;;  %p2954_p10 = scmp.lt.s32.totalorder %s170_s0, %s170_s0 }
  0xe8   :  { %p2955_p11 = scmp.lt.s32.totalorder %s2953_s6, %s2949_s9 }
  0xea   :  { %p2956_p12 = por %p2955_p11, %p2954_p10 }
  0xec   :  { %p2957_p13 = pnand %p2956_p12, %p2950_p9 }
  0xee   :  { %2960 = shalt.err (!%p2957_p13)
}
  0xef   :  { %172 = dma.hbm_to_vmem [thread:$0]  %s3799_s12, 16, %s170_s0, [#allocation22]  }
  0xf0   :  { %s3041_s19 = smov [#allocation26]   ;;  %s2961_s22 = scalar_lea.hbm %s3801_s14, 16 }
  0xf1   :  { %s191_s28 = sshll.u32 %s3041_s19, 4  ;;  %p2962_p0 = scmp.ne.s32.totalorder %s3801_s14, %s2961_s22  ;;  %s192_s28 = int_to_ptr.vmem [resolvable:$true] %s191_s28 }
  0xf2   :  { %p2965_p1 = scmp.lt.u32.totalorder %s2961_s22, %s3801_s14 }
  0xf4   :  { %p2967_p2 = pnand %p2965_p1, %p2962_p0 }
  0xf6   :  { %2970 = shalt.err (!%p2967_p2)
}
  0xf7   :  { %s2971_s26 = scalar_lea.vmem %s192_s28, 16  ;;  %s2975_s12 = scalar_lea.vmem %s192_s28, 32 }
  0xf8   :  { %p2972_p3 = scmp.ne.s32.totalorder %s192_s28, %s2971_s26  ;;  %p2976_p4 = scmp.lt.s32.totalorder %s192_s28, %s192_s28 }
  0xf9   :  { %p2977_p5 = scmp.lt.s32.totalorder %s2975_s12, %s2971_s26 }
  0xfb   :  { %p2978_p6 = por %p2977_p5, %p2976_p4 }
  0xfd   :  { %p2979_p7 = pnand %p2978_p6, %p2972_p3 }
  0xff   :  { %2982 = shalt.err (!%p2979_p7)
}
 0x100   :  { %194 = dma.hbm_to_vmem [thread:$0]  %s3801_s14, 16, %s192_s28, [#allocation25]  }
 0x101   :  { %3005 = dma.done.wait [#allocation4], 512  }
 0x102   :  { %3006 = vsyncadd [#allocation4], 4294966784 }
 0x103   :  { %3007 = dma.done.wait [#allocation7], 528  }
 0x104   :  { %3008 = vsyncadd [#allocation7], 4294966768 }
 0x105   :  { %3009 = dma.done.wait [#allocation10], 272  }
 0x106   :  { %3010 = vsyncadd [#allocation10], 4294967024 }
 0x107   :  { %3011 = dma.done.wait [#allocation13], 512  }
 0x108   :  { %3012 = vsyncadd [#allocation13], 4294966784 }
 0x109   :  { %3013 = dma.done.wait [#allocation16], 272  }
 0x10a   :  { %3014 = vsyncadd [#allocation16], 4294967024 }
 0x10b   :  { %3015 = dma.done.wait [#allocation19], 32  }
 0x10c   :  { %3016 = vsyncadd [#allocation19], 4294967264 }
 0x10d   :  { %3017 = dma.done.wait [#allocation22], 272  }
 0x10e   :  { %3018 = vsyncadd [#allocation22], 4294967024 }
 0x10f   :  { %3019 = dma.done.wait [#allocation25], 1040  }
 0x110   :  { %3020 = vsyncadd [#allocation25], 4294966256  ;;  %vm247_vm0 = vcmask 261120   ;;  %v243_v0 = vld [vmem:[#allocation3] sm:$0xff]  ;;  %v245_v1 = vld [vmem:[#allocation3 + $0x10] sm:$0xff]  ;;  %vm3043_vm1 = vmmov 0  }
 0x111   :  { %v244_v2 = vld [vmem:[#allocation3 + $0x8] sm:$0xff]  ;;  %v248_v3 = vsel %vm247_vm0, %v243_v0, 0.0  ;;  %v254_v4 = vsel %vm247_vm0, %v245_v1, 0.0  ;;  %v246_v5 = vld [vmem:[#allocation3 + $0x18] sm:$0xff]  ;;  %v323_v6 = vld [vmem:[#allocation6] sm:$0xff]  ;;  %vm652_vm2 = vcmask 64512  }
 0x112   :  { %v324_v7 = vld [vmem:[#allocation6 + $0x8] sm:$0xff]  ;;  %249 = vadd.xlane.f32.xlu0 %v248_v3  ;;  %255 = vadd.xlane.f32.xlu1 %v254_v4  ;;  %v251_v8 = vsel %vm247_vm0, %v244_v2, 0.0  ;;  %v257_v9 = vsel %vm247_vm0, %v246_v5, 0.0  ;;  %v327_v10 = vsel %vm247_vm0, %v323_v6, 0.0  ;;  %v325_v12 = vld [vmem:[#allocation6 + $0x10] sm:$0xff]  ;;  %v326_v13 = vld [vmem:[#allocation6 + $0x18] sm:$0xff] }
 0x113   :  { %v330_v11 = vsel %vm247_vm0, %v324_v7, 0.0  ;;  %v333_v14 = vsel %vm247_vm0, %v325_v12, 0.0  ;;  %v336_v15 = vsel %vm247_vm0, %v326_v13, 0.0  ;;  %v2539_v56 = vld [vmem:[#allocation11] sm:$0xff]   ;;  %v2540_v57 = vld [vmem:[#allocation11 + $0x8] sm:$0xff]   ;;  %v3418_v58 = vld [vmem:[#allocation12] sm:$0xff]  }
 0x114   :  { %2286 = vmatprep.subr.bf16.mxu0 %v2539_v56  ;;  %s3044_s14 = smov 120   ;;  %s3045_s29 = smov 112   ;;  %vm1723_vm3 = vcmask 130048   ;;  %vm1728_vm4 = vcmask 195584  }
 0x115   :  { %2287 = vmatpush3.bf16.msra.mxu0 %v2539_v56  ;;  %s3046_s13 = smov 104   ;;  %s3047_s7 = smov 16  }
 0x116   :  { %252 = vadd.xlane.f32.xlu0 %v251_v8  ;;  %258 = vadd.xlane.f32.xlu1 %v257_v9  ;;  %s3048_s23 = smov 24   ;;  %s3049_s25 = smov [#allocation27]  }
 0x117   :  { %2288 = vmatprep.subr.bf16.mxu0 %v2540_v57  ;;  %s2130_s11 = sshll.u32 %s3049_s25, 4  ;;  %s2131_s11 = int_to_ptr.vmem [resolvable:$true] %s2130_s11 }
 0x118   :  { %s2983_s20 = scalar_lea.vmem %s2131_s11, 512  ;;  %p2988_p9 = scmp.lt.s32.totalorder %s2131_s11, %s2131_s11 }
 0x119   :  { %2289 = vmatpush3.bf16.msra.mxu0 %v2540_v57  ;;  %v2543_v57 = vld [vmem:[#allocation14] sm:$0xff]   ;;  %p2984_p8 = scmp.ne.s32.totalorder %s2131_s11, %s2983_s20  ;;  %p2989_p10 = scmp.lt.s32.totalorder %s2983_s20, %s2983_s20 }
 0x11a   :  { %328 = vadd.xlane.f32.xlu0 %v327_v10  ;;  %331 = vadd.xlane.f32.xlu1 %v330_v11 }
 0x11b   :  { %2294 = vmatprep.subr.bf16.mxu0 %v3418_v58  ;;  %p2990_p11 = por %p2989_p10, %p2988_p9 }
 0x11d   :  { %p2991_p12 = pnand %p2990_p11, %p2984_p8 }
 0x11e   :  { %334 = vadd.xlane.f32.xlu0 %v333_v14  ;;  %337 = vadd.xlane.f32.xlu1 %v336_v15 }
 0x19f   :  { %v250_v16 = vpop.xlane.xlu0 %249  ;;  %v256_v17 = vpop.xlane.xlu1 %255 }
 0x1a0   :  { %v261_v18 = vmul.f32 0.03125, %v250_v16  ;;  %v263_v19 = vmul.f32 0.03125, %v256_v17 }
 0x1a2   :  { %v3378_v20 = vsub.f32 %v243_v0, %v261_v18  ;;  %v3380_v21 = vsub.f32 %v245_v1, %v263_v19  ;;  %v2149_v19 = vld [vmem:[#allocation8] ss:$0 sm:$0xff] }
 0x1a3   :  { %v253_v22 = vpop.xlane.xlu0 %252  ;;  %v259_v23 = vpop.xlane.xlu1 %258 }
 0x1a4   :  { %v262_v24 = vmul.f32 0.03125, %v253_v22  ;;  %v264_v25 = vmul.f32 0.03125, %v259_v23  ;;  %v269_v26 = vmul.f32 %v3378_v20, %v3378_v20  ;;  %v271_v27 = vmul.f32 %v3380_v21, %v3380_v21 }
 0x1a6   :  { %v3386_v28 = vsub.f32 %v244_v2, %v262_v24  ;;  %v3388_v29 = vsub.f32 %v246_v5, %v264_v25  ;;  %v273_v30 = vsel %vm247_vm0, %v269_v26, 0.0  ;;  %v279_v33 = vsel %vm247_vm0, %v271_v27, 0.0 }
 0x1a7   :  { %274 = vadd.xlane.f32.xlu0 %v273_v30  ;;  %v329_v31 = vpop.xlane.xlu0 %328  ;;  %v332_v32 = vpop.xlane.xlu1 %331 }
 0x1a8   :  { %v339_v34 = vmul.f32 0.03125, %v329_v31  ;;  %v340_v35 = vmul.f32 0.03125, %v332_v32  ;;  %v270_v36 = vmul.f32 %v3386_v28, %v3386_v28  ;;  %v272_v37 = vmul.f32 %v3388_v29, %v3388_v29  ;;  %v2150_v31 = vld [vmem:[#allocation9] ss:$0 sm:$0xff] }
 0x1aa   :  { %v3396_v38 = vsub.f32 %v323_v6, %v339_v34  ;;  %v3398_v39 = vsub.f32 %v324_v7, %v340_v35  ;;  %v276_v40 = vsel %vm247_vm0, %v270_v36, 0.0  ;;  %v282_v43 = vsel %vm247_vm0, %v272_v37, 0.0 }
 0x1ab   :  { %280 = vadd.xlane.f32.xlu0 %v279_v33  ;;  %277 = vadd.xlane.f32.xlu1 %v276_v40  ;;  %v335_v41 = vpop.xlane.xlu0 %334  ;;  %v338_v42 = vpop.xlane.xlu1 %337 }
 0x1ac   :  { %v341_v44 = vmul.f32 0.03125, %v335_v41  ;;  %v342_v45 = vmul.f32 0.03125, %v338_v42  ;;  %v347_v46 = vmul.f32 %v3396_v38, %v3396_v38  ;;  %v348_v47 = vmul.f32 %v3398_v39, %v3398_v39 }
 0x1ae   :  { %v3406_v48 = vsub.f32 %v325_v12, %v341_v44  ;;  %v3408_v49 = vsub.f32 %v326_v13, %v342_v45  ;;  %v351_v50 = vsel %vm247_vm0, %v347_v46, 0.0  ;;  %v354_v51 = vsel %vm247_vm0, %v348_v47, 0.0 }
 0x1af   :  { %283 = vadd.xlane.f32.xlu1 %v282_v43  ;;  %352 = vadd.xlane.f32.xlu0 %v351_v50 }
 0x1b0   :  { %v349_v52 = vmul.f32 %v3406_v48, %v3406_v48  ;;  %v350_v53 = vmul.f32 %v3408_v49, %v3408_v49 }
 0x1b2   :  { %v357_v54 = vsel %vm247_vm0, %v349_v52, 0.0  ;;  %v360_v55 = vsel %vm247_vm0, %v350_v53, 0.0 }
 0x1b3   :  { %355 = vadd.xlane.f32.xlu1 %v354_v51  ;;  %358 = vadd.xlane.f32.xlu0 %v357_v54  ;;  %v2542_v51 = vld [vmem:[#allocation12 + $0x8] sm:$0xff]  }
 0x1b7   :  { %361 = vadd.xlane.f32.xlu1 %v360_v55 }
 0x234   :  { %v275_v59 = vpop.xlane.xlu0 %274 }
 0x235   :  { %v285_v60 = vmul.f32 0.03125, %v275_v59 }
 0x237   :  { %v289_v61 = vadd.f32 1e-05, %v285_v60 }
 0x238   :  { %v278_v62 = vpop.xlane.xlu1 %277  ;;  %v281_v63 = vpop.xlane.xlu0 %280 }
 0x239   :  { %2557 = vrsqrt.f32 %v289_v61  ;;  %v286_v0 = vmul.f32 0.03125, %v278_v62  ;;  %v287_v1 = vmul.f32 0.03125, %v281_v63 }
 0x23b   :  { %v290_v2 = vadd.f32 1e-05, %v286_v0  ;;  %v291_v3 = vadd.f32 1e-05, %v287_v1  ;;  %v3042_v0 = vmov 0.0  }
 0x23c   :  { %v284_v4 = vpop.xlane.xlu1 %283  ;;  %v353_v5 = vpop.xlane.xlu0 %352  ;;  %2318 = vmatprep.subr.bf16.mxu1 %v3042_v0  ;;  %2322 = vmatprep.mubr.msk.bf16.mxu1 %vm3043_vm1, %v3042_v0 }
 0x23d   :  { %2559 = vrsqrt.f32 %v290_v2  ;;  %v288_v6 = vmul.f32 0.03125, %v284_v4  ;;  %v363_v7 = vmul.f32 0.03125, %v353_v5 }
 0x23e   :  { %2561 = vrsqrt.f32 %v291_v3 }
 0x23f   :  { %v292_v8 = vadd.f32 1e-05, %v288_v6  ;;  %v367_v9 = vadd.f32 1e-05, %v363_v7 }
 0x240   :  { %v356_v10 = vpop.xlane.xlu1 %355  ;;  %v359_v11 = vpop.xlane.xlu0 %358 }
 0x241   :  { %2563 = vrsqrt.f32 %v292_v8  ;;  %v364_v12 = vmul.f32 0.03125, %v356_v10  ;;  %v365_v13 = vmul.f32 0.03125, %v359_v11 }
 0x242   :  { %2565 = vrsqrt.f32 %v367_v9 }
 0x243   :  { %v2558_v14 = vpop.eup %2557  ;;  %v368_v15 = vadd.f32 1e-05, %v364_v12  ;;  %v369_v16 = vadd.f32 1e-05, %v365_v13 }
 0x244   :  { %v362_v17 = vpop.xlane.xlu1 %361  ;;  %v297_v18 = vmul.f32 %v2558_v14, %v3378_v20 }
 0x245   :  { %2567 = vrsqrt.f32 %v368_v15  ;;  %v366_v22 = vmul.f32 0.03125, %v362_v17 }
 0x246   :  { %2569 = vrsqrt.f32 %v369_v16  ;;  %v307_v27 = vmul.f32 %v2149_v19, %v297_v18 }
 0x247   :  { %v2560_v23 = vpop.eup %2559  ;;  %v370_v24 = vadd.f32 1e-05, %v366_v22 }
 0x248   :  { %v2562_v25 = vpop.eup %2561  ;;  %v298_v26 = vmul.f32 %v2560_v23, %v3386_v28  ;;  %v317_v20 = vadd.f32 %v2150_v31, %v307_v27 }
 0x249   :  { %v299_v30 = vmul.f32 %v2562_v25, %v3380_v21  ;;  %2571 = vrsqrt.f32 %v370_v24 }
 0x24a   :  { %v308_v32 = vmul.f32 %v2149_v19, %v298_v26 }
 0x24b   :  { %v2564_v33 = vpop.eup %2563  ;;  %v309_v37 = vmul.f32 %v2149_v19, %v299_v30 }
 0x24c   :  { %v2566_v34 = vpop.eup %2565  ;;  %v300_v35 = vmul.f32 %v2564_v33, %v3388_v29  ;;  %v318_v36 = vadd.f32 %v2150_v31, %v308_v32 }
 0x24d   :  { %v375_v40 = vmul.f32 %v2566_v34, %v3396_v38  ;;  %v319_v21 = vadd.f32 %v2150_v31, %v309_v37 }
 0x24e   :  { %v321_v41 = vpack.c.bf16 %v318_v36, %v317_v20  ;;  %v310_v42 = vmul.f32 %v2149_v19, %v300_v35 }
 0x24f   :  { %v2568_v43 = vpop.eup %2567  ;;  %v379_v28 = vmul.f32 %v2149_v19, %v375_v40 }
 0x250   :  { %v2570_v44 = vpop.eup %2569  ;;  %v376_v45 = vmul.f32 %v2568_v43, %v3398_v39  ;;  %389 = vst.msk [vmem:[#allocation2] sm:$0xff] %vm247_vm0, %v321_v41  ;;  %2290 = vmatprep.mubr.msk.bf16.mxu0 %vm247_vm0, %v321_v41  ;;  %v320_v46 = vadd.f32 %v2150_v31, %v310_v42 }
 0x251   :  { %v377_v29 = vmul.f32 %v2570_v44, %v3406_v48  ;;  %v383_v38 = vadd.f32 %v2150_v31, %v379_v28 }
 0x252   :  { %v380_v47 = vmul.f32 %v2149_v19, %v376_v45  ;;  %v322_v50 = vpack.c.bf16 %v320_v46, %v319_v21 }
 0x253   :  { %v2572_v52 = vpop.eup %2571  ;;  %v381_v54 = vmul.f32 %v2149_v19, %v377_v29 }
 0x254   :  { %v384_v53 = vadd.f32 %v2150_v31, %v380_v47  ;;  %v378_v55 = vmul.f32 %v2572_v52, %v3408_v49  ;;  %390 = vst.msk [vmem:[#allocation2 + $0x10] sm:$0xff] %vm247_vm0, %v322_v50  ;;  %2291 = vmatmul.mubr.msk.bf16.vlgmr.msra.gmra.mrb[0].mxu0 %vm247_vm0, %v322_v50  ;;  %v2544_v49 = vld [vmem:[#allocation14 + $0x8] sm:$0xff]  }
 0x255   :  { %2295 = vmatpush3.bf16.msra.mxu0 %v3418_v58  ;;  %v385_v59 = vadd.f32 %v2150_v31, %v381_v54 }
 0x256   :  { %v387_v39 = vpack.c.bf16 %v384_v53, %v383_v38  ;;  %v382_v56 = vmul.f32 %v2149_v19, %v378_v55  ;;  %2296 = vmatprep.subr.bf16.mxu0 %v2542_v51 }
 0x257   :  { %v393_v48 = vld [vmem:[#allocation2] sm:$0xff] }
 0x258   :  { %391 = vst.msk [vmem:[#allocation2 + $0x8] sm:$0xff] %vm247_vm0, %v387_v39  ;;  %v386_v60 = vadd.f32 %v2150_v31, %v382_v56  ;;  %2298 = vmatprep.mubr.msk.bf16.mxu0 %vm247_vm0, %v393_v48 }
 0x259   :  { %2297 = vmatpush3.bf16.msra.mxu0 %v2542_v51 }
 0x25a   :  { %v388_v61 = vpack.c.bf16 %v386_v60, %v385_v59  ;;  %2306 = vmatprep.subr.bf16.mxu0 %v2543_v57 }
 0x25b   :  { %v395_v58 = vld [vmem:[#allocation2 + $0x10] sm:$0xff] }
 0x25c   :  { %392 = vst.msk [vmem:[#allocation2 + $0x18] sm:$0xff] %vm247_vm0, %v388_v61 }
 0x25f   :  { %v394_v62 = vld [vmem:[#allocation2 + $0x8] sm:$0xff] }
 0x260   :  { %2299 = vmatmul.mubr.msk.bf16.vlgmr.msra.gmra.mrb[4].mxu0 %vm247_vm0, %v394_v62 }
 0x261   :  { %2302 = vmatprep.mubr.msk.bf16.mxu0 %vm247_vm0, %v395_v58  ;;  %2307 = vmatpush3.bf16.msra.mxu0 %v2543_v57 }
 0x262   :  { %2308 = vmatprep.subr.bf16.mxu0 %v2544_v49 }
 0x263   :  { %v396_v63 = vld [vmem:[#allocation2 + $0x18] sm:$0xff] }
 0x265   :  { %2309 = vmatpush3.bf16.msra.mxu0 %v2544_v49 }
 0x266   :  { %2326 = vmatprep.subr.bf16.mxu0 %v3042_v0 }
 0x268   :  { %2303 = vmatmul.mubr.msk.bf16.gmra.mrb[8].mxu0 %vm247_vm0, %v396_v63 }
 0x269   :  { %2310 = vmatprep.mubr.msk.bf16.mxu0 %vm247_vm0, %v393_v48 }
 0x270   :  { %2311 = vmatmul.mubr.msk.bf16.vlgmr.msra.gmra.mrb[12].mxu0 %vm247_vm0, %v394_v62 }
 0x271   :  { %2314 = vmatprep.mubr.msk.bf16.mxu0 %vm247_vm0, %v395_v58 }
 0x278   :  { %2315 = vmatmul.mubr.msk.bf16.gmra.mrb[16].mxu0 %vm247_vm0, %v396_v63 }
 0x279   :  { %2330 = vmatprep.mubr.msk.bf16.mxu0 %vm3043_vm1, %v3042_v0 }
 0x327   :  { %v2292_v1 = vpop.f32.mrb[0].mxu0 }
 0x328   :  { %v453_v2 = vpop.f32.mrb[1].mxu0 }
 0x329   :  { %v2293_v3 = vpop.f32.mrb[2].mxu0 }
 0x32a   :  { %v3450_v4 = vpack.c.bf16 %v2293_v3, %v2292_v1  ;;  %v456_v5 = vpop.f32.mrb[3].mxu0 }
 0x32b   :  { %v3452_v6 = vpack.c.bf16 %v456_v5, %v453_v2 }
 0x333   :  { %v2300_v7 = vpop.f32.mrb[4].mxu0 }
 0x334   :  { %v532_v8 = vpop.f32.mrb[5].mxu0 }
 0x335   :  { %v2301_v9 = vpop.f32.mrb[6].mxu0 }
 0x336   :  { %v3454_v10 = vpack.c.bf16 %v2301_v9, %v2300_v7  ;;  %v535_v11 = vpop.f32.mrb[7].mxu0 }
 0x337   :  { %v3456_v12 = vpack.c.bf16 %v535_v11, %v532_v8 }
 0x338   :  { %v660_v22 = vsel %vm652_vm2, %v3454_v10, 0 }
 0x339   :  { %v657_v13 = vsel %vm652_vm2, %v3456_v12, 0 }
 0x33a   :  { %2319 = vmatpush3.bf16.xpose.msra.mxu1 %v657_v13 }
 0x33b   :  { %v2304_v14 = vpop.f32.mrb[8].mxu0  ;;  %2320 = vmatprep.subr.bf16.mxu1 %v3042_v0 }
 0x33c   :  { %v548_v15 = vpop.f32.mrb[9].mxu0 }
 0x33d   :  { %v2305_v16 = vpop.f32.mrb[10].mxu0 }
 0x33e   :  { %v3461_v17 = vpack.c.bf16 %v2305_v16, %v2304_v14  ;;  %v551_v18 = vpop.f32.mrb[11].mxu0 }
 0x33f   :  { %v3463_v19 = vpack.c.bf16 %v551_v18, %v548_v15 }
 0x340   :  { %v710_v32 = vsel %vm652_vm2, %v3461_v17, 0 }
 0x341   :  { %v707_v23 = vsel %vm652_vm2, %v3463_v19, 0 }
 0x342   :  { %2321 = vmatpush3.bf16.xpose.msra.mxu1 %v660_v22  ;;  %2327 = vmatpush3.bf16.xpose.msra.mxu0 %v707_v23 }
 0x343   :  { %v2312_v24 = vpop.f32.mrb[12].mxu0  ;;  %2328 = vmatprep.subr.bf16.mxu0 %v3042_v0  ;;  %2334 = vmatprep.subr.bf16.mxu1 %v3042_v0 }
 0x344   :  { %v617_v25 = vpop.f32.mrb[13].mxu0 }
 0x345   :  { %v2313_v26 = vpop.f32.mrb[14].mxu0 }
 0x346   :  { %v3471_v27 = vpack.c.bf16 %v2313_v26, %v2312_v24  ;;  %v620_v30 = vpop.f32.mrb[15].mxu0 }
 0x347   :  { %v3473_v31 = vpack.c.bf16 %v620_v30, %v617_v25 }
 0x349   :  { %2323 = vmatmul.mubr.msk.bf16.vlgmr.msra.gmra.mrb[0].mxu1 %vm652_vm2, %v3452_v6 }
 0x34a   :  { %2329 = vmatpush3.bf16.xpose.msra.mxu0 %v710_v32  ;;  %2335 = vmatpush3.bf16.msra.mxu1 %v3473_v31 }
 0x34b   :  { %v2316_v33 = vpop.f32.mrb[16].mxu0  ;;  %2336 = vmatprep.subr.bf16.mxu1 %v3042_v0  ;;  %2342 = vmatprep.subr.bf16.mxu0 %v3042_v0 }
 0x34c   :  { %v633_v34 = vpop.f32.mrb[17].mxu0  ;;  %2338 = vmatprep.mubr.msk.bf16.mxu1 %vm3043_vm1, %v3042_v0 }
 0x34d   :  { %v2317_v35 = vpop.f32.mrb[18].mxu0 }
 0x34e   :  { %v3484_v20 = vpack.c.bf16 %v2317_v35, %v2316_v33  ;;  %v636_v36 = vpop.f32.mrb[19].mxu0  ;;  %2337 = vmatpush3.bf16.msra.mxu1 %v3471_v27 }
 0x34f   :  { %v3487_v37 = vpack.c.bf16 %v636_v36, %v633_v34  ;;  %2350 = vmatprep.subr.bf16.mxu1 %v3042_v0 }
 0x351   :  { %2331 = vmatmul.mubr.msk.bf16.vlgmr.msra.gmra.mrb[20].mxu0 %vm652_vm2, %v3450_v4 }
 0x352   :  { %2343 = vmatpush3.bf16.msra.mxu0 %v3487_v37  ;;  %2346 = vmatprep.mubr.msk.bf16.mxu0 %vm3043_vm1, %v3042_v0 }
 0x353   :  { %2344 = vmatprep.subr.bf16.mxu0 %v3042_v0 }
 0x356   :  { %2345 = vmatpush3.bf16.msra.mxu0 %v3484_v20 }
 0x357   :  { %2358 = vmatprep.subr.bf16.mxu0 %v3042_v0 }
 0x41c   :  { %v696_v40 = vpop.f32.mrb[0].mxu1 }
 0x41d   :  { %v2324_v41 = vpop.f32.mrb[1].mxu1  ;;  %v753_v42 = vsel %vm247_vm0, %v696_v40, -inf }
 0x41e   :  { %754 = vmax.xlane.f32.xlu0 %v753_v42  ;;  %v699_v43 = vpop.f32.mrb[2].mxu1 }
 0x41f   :  { %v2325_v44 = vpop.f32.mrb[3].mxu1  ;;  %v756_v28 = vsel %vm247_vm0, %v699_v43, -inf }
 0x420   :  { %757 = vmax.xlane.f32.xlu1 %v756_v28 }
 0x424   :  { %v746_v45 = vpop.f32.mrb[20].mxu0 }
 0x425   :  { %v2332_v21 = vpop.f32.mrb[21].mxu0  ;;  %v759_v46 = vsel %vm247_vm0, %v746_v45, -inf }
 0x426   :  { %760 = vmax.xlane.f32.xlu0 %v759_v46  ;;  %v749_v29 = vpop.f32.mrb[22].mxu0 }
 0x427   :  { %v2333_v47 = vpop.f32.mrb[23].mxu0  ;;  %v762_v50 = vsel %vm247_vm0, %v749_v29, -inf }
 0x431   :  { %951 = vrot.lane.b32.xlu1 %v3463_v19, %s3044_s14 }
 0x43c   :  { %892 = vrot.lane.b32.xlu0 %v3456_v12, %s3044_s14 }
 0x440   :  { %888 = vrot.lane.b32.xlu0 %v3452_v6, %s3044_s14 }
 0x444   :  { %1049 = vrot.lane.b32.xlu0 %v3473_v31, %s3044_s14 }
 0x455   :  { %763 = vmax.xlane.f32.xlu1 %v762_v50 }
 0x466   :  { %894 = vrot.lane.b32.xlu1 %v3454_v10, %s3044_s14 }
 0x46a   :  { %953 = vrot.lane.b32.xlu1 %v3461_v17, %s3044_s14 }
 0x46e   :  { %947 = vrot.lane.b32.xlu1 %v3450_v4, %s3044_s14 }
 0x472   :  { %1101 = vrot.lane.b32.xlu1 %v3487_v37, %s3044_s14 }
 0x476   :  { %1051 = vrot.lane.b32.xlu1 %v3471_v27, %s3044_s14 }
 0x47a   :  { %1103 = vrot.lane.b32.xlu1 %v3484_v20, %s3044_s14 }
 0x4ab   :  { %v755_v51 = vpop.xlane.xlu0 %754 }
 0x4ac   :  { %v765_v52 = vsub.f32 %v696_v40, %v755_v51 }
 0x4ad   :  { %v758_v38 = vpop.xlane.xlu1 %757 }
 0x4ae   :  { %v769_v53 = vmul.f32 1.442695, %v765_v52  ;;  %v766_v54 = vsub.f32 %v699_v43, %v758_v38 }
 0x4b0   :  { %v771_v55 = vmul.f32 1.442695, %v766_v54  ;;  %2573 = vpow2.f32 %v769_v53 }
 0x4b1   :  { %v952_v61 = vpop.permute.xlu1 %951 }
 0x4b2   :  { %2575 = vpow2.f32 %v771_v55  ;;  %v959_v16 = vsel %vm652_vm2, %v952_v61, 0 }
 0x4b3   :  { %v761_v39 = vpop.xlane.xlu0 %760 }
 0x4b4   :  { %v767_v49 = vsub.f32 %v746_v45, %v761_v39 }
 0x4b6   :  { %v773_v62 = vmul.f32 1.442695, %v767_v49 }
 0x4b7   :  { %v893_v48 = vpop.permute.xlu0 %892 }
 0x4b8   :  { %v900_v60 = vsel %vm652_vm2, %v893_v48, 0  ;;  %2577 = vpow2.f32 %v773_v62 }
 0x4ba   :  { %v3512_v56 = vpop.eup %2573 }
 0x4bb   :  { %v889_v5 = vpop.permute.xlu0 %888 }
 0x4bc   :  { %v3514_v57 = vpop.eup %2575 }
 0x4bd   :  { %v793_v59 = vpack.c.bf16 %v3514_v57, %v3512_v56 }
 0x4bf   :  { %2339 = vmatmul.mubr.msk.bf16.vlgmr.msra.gmra.mrb[4].mxu1 %vm247_vm0, %v793_v59  ;;  %v1050_v9 = vpop.permute.xlu0 %1049 }
 0x4c0   :  { %2351 = vmatpush3.bf16.xpose.msra.mxu1 %v900_v60  ;;  %2354 = vmatprep.mubr.msk.bf16.mxu1 %vm3043_vm1, %v3042_v0 }
 0x4c1   :  { %2352 = vmatprep.subr.bf16.mxu1 %v3042_v0 }
 0x4c2   :  { %v3526_v11 = vpop.eup %2577 }
 0x4e2   :  { %v764_v58 = vpop.xlane.xlu1 %763 }
 0x4e3   :  { %v768_v63 = vsub.f32 %v749_v29, %v764_v58 }
 0x4e5   :  { %v775_v1 = vmul.f32 1.442695, %v768_v63 }
 0x4e6   :  { %v895_v2 = vpop.permute.xlu1 %894 }
 0x4e7   :  { %2579 = vpow2.f32 %v775_v1  ;;  %v903_v3 = vsel %vm652_vm2, %v895_v2, 0 }
 0x4e8   :  { %2353 = vmatpush3.bf16.xpose.msra.mxu1 %v903_v3 }
 0x4e9   :  { %2366 = vmatprep.subr.bf16.mxu1 %v3042_v0 }
 0x4ea   :  { %v954_v7 = vpop.permute.xlu1 %953 }
 0x4eb   :  { %v962_v22 = vsel %vm652_vm2, %v954_v7, 0 }
 0x4ee   :  { %v948_v8 = vpop.permute.xlu1 %947 }
 0x4ef   :  { %2355 = vmatmul.mubr.msk.bf16.vlgmr.msra.gmra.mrb[8].mxu1 %vm652_vm2, %v889_v5 }
 0x4f0   :  { %2367 = vmatpush3.bf16.msra.mxu1 %v1050_v9  ;;  %2370 = vmatprep.mubr.msk.bf16.mxu1 %vm3043_vm1, %v3042_v0 }
 0x4f1   :  { %v3530_v13 = vpop.eup %2579  ;;  %2368 = vmatprep.subr.bf16.mxu1 %v3042_v0 }
 0x4f2   :  { %v1102_v14 = vpop.permute.xlu1 %1101  ;;  %v794_v15 = vpack.c.bf16 %v3530_v13, %v3526_v11 }
 0x4f4   :  { %2347 = vmatmul.mubr.msk.bf16.vlgmr.msra.gmra.mrb[24].mxu0 %vm247_vm0, %v794_v15 }
 0x4f5   :  { %2359 = vmatpush3.bf16.xpose.msra.mxu0 %v959_v16  ;;  %2362 = vmatprep.mubr.msk.bf16.mxu0 %vm3043_vm1, %v3042_v0 }
 0x4f6   :  { %v1052_v18 = vpop.permute.xlu1 %1051  ;;  %2360 = vmatprep.subr.bf16.mxu0 %v3042_v0 }
 0x4f7   :  { %2369 = vmatpush3.bf16.msra.mxu1 %v1052_v18 }
 0x4f8   :  { %2382 = vmatprep.subr.bf16.mxu1 %v3042_v0 }
 0x4fa   :  { %v1104_v23 = vpop.permute.xlu1 %1103 }
 0x4fd   :  { %2361 = vmatpush3.bf16.xpose.msra.mxu0 %v962_v22 }
 0x4fe   :  { %2374 = vmatprep.subr.bf16.mxu0 %v3042_v0 }
 0x504   :  { %2363 = vmatmul.mubr.msk.bf16.vlgmr.msra.gmra.mrb[28].mxu0 %vm652_vm2, %v948_v8 }
 0x505   :  { %2375 = vmatpush3.bf16.msra.mxu0 %v1102_v14  ;;  %2378 = vmatprep.mubr.msk.bf16.mxu0 %vm3043_vm1, %v3042_v0 }
 0x506   :  { %2376 = vmatprep.subr.bf16.mxu0 %v3042_v0 }
 0x509   :  { %2377 = vmatpush3.bf16.msra.mxu0 %v1104_v23 }
 0x50a   :  { %2390 = vmatprep.subr.bf16.mxu0 %v3042_v0 }
 0x592   :  { %v3548_v24 = vpop.f32.mrb[4].mxu1 }
 0x593   :  { %v2340_v25 = vpop.f32.mrb[5].mxu1 }
 0x594   :  { %v3550_v26 = vpop.f32.mrb[6].mxu1 }
 0x595   :  { %v2341_v30 = vpop.f32.mrb[7].mxu1 }
 0x5c2   :  { %v939_v32 = vpop.f32.mrb[8].mxu1 }
 0x5c3   :  { %v2356_v33 = vpop.f32.mrb[9].mxu1  ;;  %v1005_v34 = vsel %vm247_vm0, %v939_v32, -inf }
 0x5c4   :  { %1006 = vmax.xlane.f32.xlu0 %v1005_v34  ;;  %v942_v35 = vpop.f32.mrb[10].mxu1 }
 0x5c5   :  { %v2357_v36 = vpop.f32.mrb[11].mxu1  ;;  %v1008_v40 = vsel %vm247_vm0, %v942_v35, -inf }
 0x5c6   :  { %1009 = vmax.xlane.f32.xlu1 %v1008_v40 }
 0x5c7   :  { %v3554_v41 = vpop.f32.mrb[24].mxu0 }
 0x5c8   :  { %v2348_v42 = vpop.f32.mrb[25].mxu0 }
 0x5c9   :  { %v3556_v43 = vpop.f32.mrb[26].mxu0 }
 0x5ca   :  { %v2349_v44 = vpop.f32.mrb[27].mxu0 }
 0x5d7   :  { %v998_v28 = vpop.f32.mrb[28].mxu0  ;;  %1213 = vrot.lane.b32.xlu1 %v3463_v19, %s3045_s29 }
 0x5d8   :  { %v2364_v45 = vpop.f32.mrb[29].mxu0  ;;  %v1011_v21 = vsel %vm247_vm0, %v998_v28, -inf }
 0x5d9   :  { %1012 = vmax.xlane.f32.xlu0 %v1011_v21  ;;  %v1001_v46 = vpop.f32.mrb[30].mxu0 }
 0x5da   :  { %v2365_v29 = vpop.f32.mrb[31].mxu0  ;;  %v1014_v47 = vsel %vm247_vm0, %v1001_v46, -inf }
 0x5db   :  { %1215 = vrot.lane.b32.xlu1 %v3461_v17, %s3045_s29 }
 0x5dd   :  { %1015 = vmax.xlane.f32.xlu0 %v1014_v47 }
 0x5df   :  { %1211 = vrot.lane.b32.xlu1 %v3450_v4, %s3045_s29 }
 0x5e3   :  { %1359 = vrot.lane.b32.xlu1 %v3487_v37, %s3045_s29 }
 0x5e7   :  { %1311 = vrot.lane.b32.xlu1 %v3471_v27, %s3045_s29 }
 0x5eb   :  { %1361 = vrot.lane.b32.xlu1 %v3484_v20, %s3045_s29 }
 0x5f3   :  { %1157 = vrot.lane.b32.xlu0 %v3456_v12, %s3045_s29 }
 0x5f7   :  { %1159 = vrot.lane.b32.xlu0 %v3454_v10, %s3045_s29 }
 0x5fb   :  { %1155 = vrot.lane.b32.xlu0 %v3452_v6, %s3045_s29 }
 0x5ff   :  { %1309 = vrot.lane.b32.xlu0 %v3473_v31, %s3045_s29 }
 0x651   :  { %v1007_v50 = vpop.xlane.xlu0 %1006 }
 0x652   :  { %v1017_v51 = vsub.f32 %v939_v32, %v1007_v50 }
 0x653   :  { %v1010_v52 = vpop.xlane.xlu1 %1009 }
 0x654   :  { %v1021_v38 = vmul.f32 1.442695, %v1017_v51  ;;  %v1018_v53 = vsub.f32 %v942_v35, %v1010_v52 }
 0x656   :  { %v1023_v54 = vmul.f32 1.442695, %v1018_v53  ;;  %2581 = vpow2.f32 %v1021_v38 }
 0x657   :  { %v1214_v62 = vpop.permute.xlu1 %1213 }
 0x658   :  { %2583 = vpow2.f32 %v1023_v54  ;;  %v1221_v18 = vsel %vm652_vm2, %v1214_v62, 0 }
 0x65b   :  { %v1216_v3 = vpop.permute.xlu1 %1215 }
 0x65c   :  { %v1224_v30 = vsel %vm652_vm2, %v1216_v3, 0 }
 0x65f   :  { %v1212_v7 = vpop.permute.xlu1 %1211 }
 0x660   :  { %v3570_v55 = vpop.eup %2581 }
 0x662   :  { %v3572_v39 = vpop.eup %2583 }
 0x663   :  { %v1045_v48 = vpack.c.bf16 %v3572_v39, %v3570_v55  ;;  %v1360_v22 = vpop.permute.xlu1 %1359 }
 0x665   :  { %2371 = vmatmul.mubr.msk.bf16.vlgmr.msra.gmra.mrb[12].mxu1 %vm247_vm0, %v1045_v48 }
 0x666   :  { %v1013_v59 = vpop.xlane.xlu0 %1012  ;;  %2386 = vmatprep.mubr.msk.bf16.mxu1 %vm3043_vm1, %v3042_v0 }
 0x667   :  { %v1019_v60 = vsub.f32 %v998_v28, %v1013_v59  ;;  %v1312_v25 = vpop.permute.xlu1 %1311 }
 0x669   :  { %v1025_v61 = vmul.f32 1.442695, %v1019_v60 }
 0x66a   :  { %v1016_v49 = vpop.xlane.xlu0 %1015 }
 0x66b   :  { %v1020_v58 = vsub.f32 %v1001_v46, %v1016_v49  ;;  %2585 = vpow2.f32 %v1025_v61  ;;  %v1362_v32 = vpop.permute.xlu1 %1361 }
 0x66d   :  { %v1027_v63 = vmul.f32 1.442695, %v1020_v58 }
 0x66e   :  { %v1158_v1 = vpop.permute.xlu0 %1157 }
 0x66f   :  { %2587 = vpow2.f32 %v1027_v63  ;;  %v1165_v2 = vsel %vm652_vm2, %v1158_v1, 0 }
 0x670   :  { %2383 = vmatpush3.bf16.xpose.msra.mxu1 %v1165_v2 }
 0x671   :  { %2384 = vmatprep.subr.bf16.mxu1 %v3042_v0 }
 0x672   :  { %v1160_v5 = vpop.permute.xlu0 %1159 }
 0x673   :  { %v1168_v8 = vsel %vm652_vm2, %v1160_v5, 0 }
 0x675   :  { %v3582_v9 = vpop.eup %2585 }
 0x676   :  { %v1156_v15 = vpop.permute.xlu0 %1155 }
 0x678   :  { %2385 = vmatpush3.bf16.xpose.msra.mxu1 %v1168_v8 }
 0x679   :  { %v3584_v14 = vpop.eup %2587  ;;  %2398 = vmatprep.subr.bf16.mxu1 %v3042_v0 }
 0x67a   :  { %v1046_v16 = vpack.c.bf16 %v3584_v14, %v3582_v9  ;;  %v1310_v23 = vpop.permute.xlu0 %1309 }
 0x67c   :  { %2379 = vmatmul.mubr.msk.bf16.vlgmr.msra.gmra.mrb[32].mxu0 %vm247_vm0, %v1046_v16 }
 0x67d   :  { %2391 = vmatpush3.bf16.xpose.msra.mxu0 %v1221_v18  ;;  %2394 = vmatprep.mubr.msk.bf16.mxu0 %vm3043_vm1, %v3042_v0 }
 0x67e   :  { %2392 = vmatprep.subr.bf16.mxu0 %v3042_v0 }
 0x67f   :  { %2387 = vmatmul.mubr.msk.bf16.vlgmr.msra.gmra.mrb[16].mxu1 %vm652_vm2, %v1156_v15 }
 0x680   :  { %2399 = vmatpush3.bf16.msra.mxu1 %v1310_v23  ;;  %2402 = vmatprep.mubr.msk.bf16.mxu1 %vm3043_vm1, %v3042_v0 }
 0x681   :  { %2400 = vmatprep.subr.bf16.mxu1 %v3042_v0 }
 0x684   :  { %2401 = vmatpush3.bf16.msra.mxu1 %v1312_v25 }
 0x685   :  { %2393 = vmatpush3.bf16.xpose.msra.mxu0 %v1224_v30  ;;  %2414 = vmatprep.subr.bf16.mxu1 %v3042_v0 }
 0x686   :  { %2406 = vmatprep.subr.bf16.mxu0 %v3042_v0 }
 0x68c   :  { %2395 = vmatmul.mubr.msk.bf16.vlgmr.msra.gmra.mrb[36].mxu0 %vm652_vm2, %v1212_v7 }
 0x68d   :  { %2407 = vmatpush3.bf16.msra.mxu0 %v1360_v22  ;;  %2410 = vmatprep.mubr.msk.bf16.mxu0 %vm3043_vm1, %v3042_v0 }
 0x68e   :  { %2408 = vmatprep.subr.bf16.mxu0 %v3042_v0 }
 0x691   :  { %2409 = vmatpush3.bf16.msra.mxu0 %v1362_v32 }
 0x692   :  { %2422 = vmatprep.subr.bf16.mxu0 %v3042_v0 }
 0x738   :  { %v3606_v33 = vpop.f32.mrb[12].mxu1 }
 0x739   :  { %v2372_v34 = vpop.f32.mrb[13].mxu1 }
 0x73a   :  { %v3608_v35 = vpop.f32.mrb[14].mxu1 }
 0x73b   :  { %v2373_v36 = vpop.f32.mrb[15].mxu1 }
 0x74f   :  { %v3610_v40 = vpop.f32.mrb[32].mxu0 }
 0x750   :  { %v2380_v42 = vpop.f32.mrb[33].mxu0 }
 0x751   :  { %v3612_v44 = vpop.f32.mrb[34].mxu0 }
 0x752   :  { %v2381_v28 = vpop.f32.mrb[35].mxu0  ;;  %v1204_v45 = vpop.f32.mrb[16].mxu1 }
 0x753   :  { %v2388_v21 = vpop.f32.mrb[17].mxu1  ;;  %v1267_v46 = vsel %vm247_vm0, %v1204_v45, -inf }
 0x754   :  { %1268 = vmax.xlane.f32.xlu0 %v1267_v46  ;;  %v1207_v29 = vpop.f32.mrb[18].mxu1 }
 0x755   :  { %v2389_v47 = vpop.f32.mrb[19].mxu1  ;;  %v1270_v50 = vsel %vm247_vm0, %v1207_v29, -inf }
 0x756   :  { %1271 = vmax.xlane.f32.xlu1 %v1270_v50 }
 0x75f   :  { %v1260_v51 = vpop.f32.mrb[36].mxu0 }
 0x760   :  { %v2396_v52 = vpop.f32.mrb[37].mxu0  ;;  %v1273_v38 = vsel %vm247_vm0, %v1260_v51, -inf }
 0x761   :  { %1274 = vmax.xlane.f32.xlu0 %v1273_v38  ;;  %v1263_v53 = vpop.f32.mrb[38].mxu0 }
 0x762   :  { %v2397_v54 = vpop.f32.mrb[39].mxu0  ;;  %v1276_v48 = vsel %vm247_vm0, %v1263_v53, -inf }
 0x765   :  { %1277 = vmax.xlane.f32.xlu0 %v1276_v48 }
 0x767   :  { %1471 = vrot.lane.b32.xlu1 %v3463_v19, %s3046_s13 }
 0x76b   :  { %1473 = vrot.lane.b32.xlu1 %v3461_v17, %s3046_s13 }
 0x76f   :  { %1469 = vrot.lane.b32.xlu1 %v3450_v4, %s3046_s13 }
 0x77b   :  { %1415 = vrot.lane.b32.xlu0 %v3456_v12, %s3046_s13 }
 0x77f   :  { %1417 = vrot.lane.b32.xlu0 %v3454_v10, %s3046_s13 }
 0x783   :  { %1413 = vrot.lane.b32.xlu0 %v3452_v6, %s3046_s13 }
 0x7e1   :  { %v1269_v59 = vpop.xlane.xlu0 %1268 }
 0x7e2   :  { %v1279_v60 = vsub.f32 %v1204_v45, %v1269_v59 }
 0x7e3   :  { %v1272_v61 = vpop.xlane.xlu1 %1271 }
 0x7e4   :  { %v1283_v49 = vmul.f32 1.442695, %v1279_v60  ;;  %v1280_v19 = vsub.f32 %v1207_v29, %v1272_v61 }
 0x7e6   :  { %v1285_v62 = vmul.f32 1.442695, %v1280_v19  ;;  %2589 = vpow2.f32 %v1283_v49 }
 0x7e7   :  { %v1472_v18 = vpop.permute.xlu1 %1471 }
 0x7e8   :  { %2591 = vpow2.f32 %v1285_v62  ;;  %v1479_v23 = vsel %vm652_vm2, %v1472_v18, 0  ;;  %v1032_v62 = vsel %vm247_vm0, %v3572_v39, 0.0 }
 0x7eb   :  { %v1474_v30 = vpop.permute.xlu1 %1473 }
 0x7ec   :  { %v1482_v32 = vsel %vm652_vm2, %v1474_v30, 0 }
 0x7ee   :  { %v1275_v17 = vpop.xlane.xlu0 %1274 }
 0x7ef   :  { %v1281_v58 = vsub.f32 %v1260_v51, %v1275_v17  ;;  %v1470_v34 = vpop.permute.xlu1 %1469 }
 0x7f0   :  { %v3630_v4 = vpop.eup %2589 }
 0x7f1   :  { %v1287_v12 = vmul.f32 1.442695, %v1281_v58  ;;  %v1291_v39 = vsel %vm247_vm0, %v3630_v4, 0.0 }
 0x7f2   :  { %v3632_v63 = vpop.eup %2591  ;;  %v1278_v1 = vpop.xlane.xlu0 %1277 }
 0x7f3   :  { %v1282_v10 = vsub.f32 %v1263_v53, %v1278_v1  ;;  %v1307_v6 = vpack.c.bf16 %v3632_v63, %v3630_v4  ;;  %2593 = vpow2.f32 %v1287_v12  ;;  %v1294_v17 = vsel %vm247_vm0, %v3632_v63, 0.0 }
 0x7f5   :  { %v1289_v2 = vmul.f32 1.442695, %v1282_v10  ;;  %2403 = vmatmul.mubr.msk.bf16.vlgmr.msra.gmra.mrb[20].mxu1 %vm247_vm0, %v1307_v6 }
 0x7f6   :  { %v1416_v3 = vpop.permute.xlu0 %1415  ;;  %2418 = vmatprep.mubr.msk.bf16.mxu1 %vm3043_vm1, %v3042_v0 }
 0x7f7   :  { %2595 = vpow2.f32 %v1289_v2  ;;  %v1423_v5 = vsel %vm652_vm2, %v1416_v3, 0 }
 0x7f8   :  { %2415 = vmatpush3.bf16.xpose.msra.mxu1 %v1423_v5 }
 0x7f9   :  { %2416 = vmatprep.subr.bf16.mxu1 %v3042_v0 }
 0x7fa   :  { %v1418_v7 = vpop.permute.xlu0 %1417 }
 0x7fb   :  { %v1426_v8 = vsel %vm652_vm2, %v1418_v7, 0 }
 0x7fd   :  { %v3642_v15 = vpop.eup %2593 }
 0x7fe   :  { %v1414_v25 = vpop.permute.xlu0 %1413  ;;  %v1297_v58 = vsel %vm247_vm0, %v3642_v15, 0.0 }
 0x800   :  { %2417 = vmatpush3.bf16.xpose.msra.mxu1 %v1426_v8 }
 0x801   :  { %v2596_v16 = vpop.eup %2595  ;;  %2430 = vmatprep.subr.bf16.mxu1 %v3042_v0 }
 0x802   :  { %v1308_v22 = vpack.c.bf16 %v2596_v16, %v3642_v15 }
 0x804   :  { %2411 = vmatmul.mubr.msk.bf16.vlgmr.msra.gmra.mrb[40].mxu0 %vm247_vm0, %v1308_v22 }
 0x805   :  { %2423 = vmatpush3.bf16.xpose.msra.mxu0 %v1479_v23  ;;  %2426 = vmatprep.mubr.msk.bf16.mxu0 %vm3043_vm1, %v3042_v0 }
 0x806   :  { %2424 = vmatprep.subr.bf16.mxu0 %v3042_v0 }
 0x807   :  { %2419 = vmatmul.mubr.msk.bf16.vlgmr.msra.gmra.mrb[24].mxu1 %vm652_vm2, %v1414_v25 }
 0x808   :  { %2434 = vmatprep.mubr.msk.bf16.mxu1 %vm3043_vm1, %v3042_v0 }
 0x80d   :  { %2425 = vmatpush3.bf16.xpose.msra.mxu0 %v1482_v32 }
 0x80e   :  { %2438 = vmatprep.subr.bf16.mxu0 %v3042_v0 }
 0x814   :  { %2427 = vmatmul.mubr.msk.bf16.vlgmr.msra.gmra.mrb[44].mxu0 %vm652_vm2, %v1470_v34 }
 0x815   :  { %2442 = vmatprep.mubr.msk.bf16.mxu0 %vm3043_vm1, %v3042_v0 }
 0x8c8   :  { %v3659_v36 = vpop.f32.mrb[20].mxu1 }
 0x8c9   :  { %v2404_v42 = vpop.f32.mrb[21].mxu1 }
 0x8ca   :  { %v3661_v28 = vpop.f32.mrb[22].mxu1 }
 0x8cb   :  { %v2405_v45 = vpop.f32.mrb[23].mxu1 }
 0x8cc   :  { %v777_v45 = vsel %vm247_vm0, %v3512_v56, 0.0 }
 0x8d7   :  { %v3663_v21 = vpop.f32.mrb[40].mxu0 }
 0x8d8   :  { %v2412_v46 = vpop.f32.mrb[41].mxu0 }
 0x8d9   :  { %v3665_v29 = vpop.f32.mrb[42].mxu0 }
 0x8da   :  { %v2413_v47 = vpop.f32.mrb[43].mxu0  ;;  %v1462_v50 = vpop.f32.mrb[24].mxu1 }
 0x8db   :  { %v2420_v51 = vpop.f32.mrb[25].mxu1  ;;  %v1525_v52 = vsel %vm247_vm0, %v1462_v50, -inf }
 0x8dc   :  { %1526 = vmax.xlane.f32.xlu0 %v1525_v52  ;;  %v1465_v38 = vpop.f32.mrb[26].mxu1  ;;  %v786_v51 = vsel %vm247_vm0, %v3530_v13, 0.0 }
 0x8dd   :  { %v2421_v53 = vpop.f32.mrb[27].mxu1  ;;  %v1528_v54 = vsel %vm247_vm0, %v1465_v38, -inf }
 0x8de   :  { %1529 = vmax.xlane.f32.xlu1 %v1528_v54 }
 0x8e7   :  { %v1518_v48 = vpop.f32.mrb[44].mxu0 }
 0x8e8   :  { %v2428_v59 = vpop.f32.mrb[45].mxu0  ;;  %v1531_v60 = vsel %vm247_vm0, %v1518_v48, -inf }
 0x8e9   :  { %1532 = vmax.xlane.f32.xlu0 %v1531_v60  ;;  %v1521_v61 = vpop.f32.mrb[46].mxu0 }
 0x8ea   :  { %v2429_v49 = vpop.f32.mrb[47].mxu0  ;;  %v1534_v19 = vsel %vm247_vm0, %v1521_v61, -inf }
 0x8ed   :  { %1535 = vmax.xlane.f32.xlu0 %v1534_v19 }
 0x8ef   :  { %1617 = vrot.lane.b32.xlu1 %v3487_v37, %s3046_s13  ;;  %v1029_v37 = vsel %vm247_vm0, %v3570_v55, 0.0 }
 0x8f3   :  { %1569 = vrot.lane.b32.xlu1 %v3471_v27, %s3046_s13  ;;  %v1300_v27 = vsel %vm247_vm0, %v2596_v16, 0.0 }
 0x8f7   :  { %1619 = vrot.lane.b32.xlu1 %v3484_v20, %s3046_s13  ;;  %v1035_v20 = vsel %vm247_vm0, %v3582_v9, 0.0 }
 0x903   :  { %1567 = vrot.lane.b32.xlu0 %v3473_v31, %s3046_s13  ;;  %v1038_v31 = vsel %vm247_vm0, %v3584_v14, 0.0 }
 0x91b   :  { %1033 = vadd.xlane.f32.xlu1 %v1032_v62 }
 0x91f   :  { %1295 = vadd.xlane.f32.xlu1 %v1294_v17 }
 0x922   :  { %1030 = vadd.xlane.f32.xlu0 %v1029_v37 }
 0x923   :  { %1301 = vadd.xlane.f32.xlu1 %v1300_v27 }
 0x926   :  { %1036 = vadd.xlane.f32.xlu0 %v1035_v20 }
 0x92a   :  { %1039 = vadd.xlane.f32.xlu0 %v1038_v31 }
 0x92e   :  { %1292 = vadd.xlane.f32.xlu0 %v1291_v39 }
 0x932   :  { %1298 = vadd.xlane.f32.xlu0 %v1297_v58 }
 0x969   :  { %v1527_v55 = vpop.xlane.xlu0 %1526 }
 0x96a   :  { %v1537_v63 = vsub.f32 %v1462_v50, %v1527_v55  ;;  %v780_v50 = vsel %vm247_vm0, %v3514_v57, 0.0 }
 0x96b   :  { %v1530_v12 = vpop.xlane.xlu1 %1529 }
 0x96c   :  { %v1541_v1 = vmul.f32 1.442695, %v1537_v63  ;;  %v1538_v10 = vsub.f32 %v1465_v38, %v1530_v12 }
 0x96e   :  { %2597 = vpow2.f32 %v1541_v1  ;;  %v1543_v9 = vmul.f32 1.442695, %v1538_v10 }
 0x96f   :  { %v1618_v6 = vpop.permute.xlu1 %1617 }
 0x970   :  { %2599 = vpow2.f32 %v1543_v9  ;;  %2439 = vmatpush3.bf16.msra.mxu0 %v1618_v6  ;;  %v2546_v6 = vld [vmem:[#allocation15 + $0x8] sm:$0xff]  }
 0x971   :  { %2440 = vmatprep.subr.bf16.mxu0 %v3042_v0 }
 0x973   :  { %v1570_v14 = vpop.permute.xlu1 %1569 }
 0x976   :  { %v1533_v2 = vpop.xlane.xlu0 %1532 }
 0x977   :  { %v1539_v4 = vsub.f32 %v1518_v48, %v1533_v2  ;;  %v1620_v3 = vpop.permute.xlu1 %1619 }
 0x978   :  { %v2598_v5 = vpop.eup %2597  ;;  %2441 = vmatpush3.bf16.msra.mxu0 %v1620_v3 }
 0x979   :  { %v1545_v7 = vmul.f32 1.442695, %v1539_v4  ;;  %v1549_v8 = vsel %vm247_vm0, %v2598_v5, 0.0 }
 0x97a   :  { %v2600_v15 = vpop.eup %2599  ;;  %v1536_v16 = vpop.xlane.xlu0 %1535  ;;  %1550 = vadd.xlane.f32.xlu0 %v1549_v8 }
 0x97b   :  { %2601 = vpow2.f32 %v1545_v7  ;;  %v1540_v18 = vsub.f32 %v1521_v61, %v1536_v16  ;;  %v1552_v22 = vsel %vm247_vm0, %v2600_v15, 0.0  ;;  %v1565_v23 = vpack.c.bf16 %v2600_v15, %v2598_v5 }
 0x97c   :  { %1553 = vadd.xlane.f32.xlu1 %v1552_v22 }
 0x97d   :  { %v1547_v25 = vmul.f32 1.442695, %v1540_v18 }
 0x97e   :  { %v1568_v30 = vpop.permute.xlu0 %1567 }
 0x97f   :  { %2603 = vpow2.f32 %v1547_v25  ;;  %2431 = vmatpush3.bf16.msra.mxu1 %v1568_v30 }
 0x980   :  { %2432 = vmatprep.subr.bf16.mxu1 %v3042_v0  ;;  %v783_v0 = vsel %vm247_vm0, %v3526_v11, 0.0 }
 0x983   :  { %2433 = vmatpush3.bf16.msra.mxu1 %v1570_v14 }
 0x985   :  { %v2602_v32 = vpop.eup %2601 }
 0x986   :  { %2435 = vmatmul.mubr.msk.bf16.vlgmr.msra.gmra.mrb[28].mxu1 %vm247_vm0, %v1565_v23  ;;  %v1555_v34 = vsel %vm247_vm0, %v2602_v32, 0.0 }
 0x987   :  { %1556 = vadd.xlane.f32.xlu0 %v1555_v34 }
 0x989   :  { %v2604_v42 = vpop.eup %2603 }
 0x98a   :  { %v1558_v46 = vsel %vm247_vm0, %v2604_v42, 0.0  ;;  %v1566_v47 = vpack.c.bf16 %v2604_v42, %v2602_v32 }
 0x98b   :  { %778 = vadd.xlane.f32.xlu0 %v777_v45  ;;  %1559 = vadd.xlane.f32.xlu1 %v1558_v46 }
 0x98c   :  { %2443 = vmatmul.mubr.msk.bf16.vlgmr.msra.gmra.mrb[48].mxu0 %vm247_vm0, %v1566_v47 }
 0x98f   :  { %784 = vadd.xlane.f32.xlu0 %v783_v0  ;;  %781 = vadd.xlane.f32.xlu1 %v780_v50 }
 0x993   :  { %787 = vadd.xlane.f32.xlu1 %v786_v51 }
 0x9a8   :  { %v1034_v56 = vpop.xlane.xlu1 %1033 }
 0x9a9   :  { %2605 = vrcp.f32 %v1034_v56 }
 0x9ac   :  { %v1296_v53 = vpop.xlane.xlu1 %1295 }
 0x9af   :  { %v1031_v52 = vpop.xlane.xlu0 %1030 }
 0x9b0   :  { %2607 = vrcp.f32 %v1031_v52  ;;  %v1302_v59 = vpop.xlane.xlu1 %1301 }
 0x9b3   :  { %v1037_v38 = vpop.xlane.xlu0 %1036  ;;  %v2606_v48 = vpop.eup %2605 }
 0x9b4   :  { %2609 = vrcp.f32 %v1037_v38  ;;  %v1152_v61 = vmul.f32 %v2606_v48, %v3608_v35 }
 0x9b7   :  { %v1040_v54 = vpop.xlane.xlu0 %1039 }
 0x9b8   :  { %2611 = vrcp.f32 %v1040_v54 }
 0x9b9   :  { %2613 = vrcp.f32 %v1296_v53 }
 0x9ba   :  { %v2608_v11 = vpop.eup %2607 }
 0x9bb   :  { %v1293_v57 = vpop.xlane.xlu0 %1292  ;;  %v1151_v60 = vmul.f32 %v2608_v11, %v3606_v33 }
 0x9bc   :  { %2615 = vrcp.f32 %v1293_v57 }
 0x9bd   :  { %v2509_v13 = vpack.i.bf16 %v1152_v61, %v1151_v60  ;;  %2617 = vrcp.f32 %v1302_v59 }
 0x9be   :  { %v2610_v19 = vpop.eup %2609 }
 0x9bf   :  { %2510 = vrot.lane.b32.xlu0 %v2509_v13, %s3026_s16  ;;  %v1299_v49 = vpop.xlane.xlu0 %1298  ;;  %v1153_v17 = vmul.f32 %v2610_v19, %v3610_v40 }
 0x9c0   :  { %2619 = vrcp.f32 %v1299_v49 }
 0x9c2   :  { %v2612_v62 = vpop.eup %2611 }
 0x9c3   :  { %v1154_v37 = vmul.f32 %v2612_v62, %v3612_v44  ;;  %v2614_v27 = vpop.eup %2613 }
 0x9c4   :  { %v1410_v35 = vmul.f32 %v2614_v27, %v3661_v28 }
 0x9c5   :  { %v2514_v20 = vpack.i.bf16 %v1154_v37, %v1153_v17 }
 0x9c6   :  { %v2616_v31 = vpop.eup %2615 }
 0x9c7   :  { %2515 = vrot.lane.b32.xlu1 %v2514_v20, %s3026_s16  ;;  %v1409_v33 = vmul.f32 %v2616_v31, %v3659_v36  ;;  %v2618_v39 = vpop.eup %2617  ;;  %v2545_v36 = vld [vmem:[#allocation15] sm:$0xff]  }
 0x9c8   :  { %v1412_v40 = vmul.f32 %v2618_v39, %v3665_v29  ;;  %2446 = vmatprep.subr.bf16.mxu1 %v2545_v36 }
 0x9c9   :  { %v2519_v58 = vpack.i.bf16 %v1410_v35, %v1409_v33  ;;  %2447 = vmatpush3.bf16.msra.mxu1 %v2545_v36 }
 0x9ca   :  { %v2620_v55 = vpop.eup %2619  ;;  %2448 = vmatprep.subr.bf16.mxu1 %v2546_v6 }
 0x9cb   :  { %2520 = vrot.lane.b32.xlu1 %v2519_v58, %s3047_s7  ;;  %v1411_v63 = vmul.f32 %v2620_v55, %v3663_v21 }
 0x9cd   :  { %v2524_v12 = vpack.i.bf16 %v1412_v40, %v1411_v63  ;;  %2449 = vmatpush3.bf16.msra.mxu1 %v2546_v6 }
 0x9cf   :  { %2525 = vrot.lane.b32.xlu1 %v2524_v12, %s3047_s7 }
 0xa07   :  { %v1551_v44 = vpop.xlane.xlu0 %1550 }
 0xa08   :  { %2621 = vrcp.f32 %v1551_v44 }
 0xa09   :  { %v1554_v1 = vpop.xlane.xlu1 %1553 }
 0xa0a   :  { %2623 = vrcp.f32 %v1554_v1 }
 0xa12   :  { %v2622_v14 = vpop.eup %2621 }
 0xa14   :  { %v1557_v10 = vpop.xlane.xlu0 %1556  ;;  %v2624_v21 = vpop.eup %2623 }
 0xa15   :  { %2625 = vrcp.f32 %v1557_v10 }
 0xa18   :  { %v1560_v9 = vpop.xlane.xlu1 %1559  ;;  %v779_v42 = vpop.xlane.xlu0 %778 }
 0xa19   :  { %2627 = vrcp.f32 %v1560_v9 }
 0xa1a   :  { %2629 = vrcp.f32 %v779_v42 }
 0xa1c   :  { %v782_v34 = vpop.xlane.xlu1 %781  ;;  %v785_v46 = vpop.xlane.xlu0 %784 }
 0xa1d   :  { %2631 = vrcp.f32 %v782_v34 }
 0xa1e   :  { %2633 = vrcp.f32 %v785_v46 }
 0xa1f   :  { %v2626_v15 = vpop.eup %2625 }
 0xa20   :  { %v788_v45 = vpop.xlane.xlu1 %787 }
 0xa21   :  { %2635 = vrcp.f32 %v788_v45 }
 0xa23   :  { %v2628_v18 = vpop.eup %2627 }
 0xa24   :  { %v2630_v50 = vpop.eup %2629 }
 0xa25   :  { %v883_v48 = vmul.f32 %v2630_v50, %v3548_v24 }
 0xa27   :  { %v2632_v56 = vpop.eup %2631 }
 0xa28   :  { %v884_v11 = vmul.f32 %v2632_v56, %v3550_v26  ;;  %v2634_v57 = vpop.eup %2633 }
 0xa29   :  { %v885_v58 = vmul.f32 %v2634_v57, %v3554_v41  ;;  %v2183_v41 = vld [vmem:[#allocation17] ss:$0 sm:$0xff] }
 0xa2b   :  { %v2636_v62 = vpop.eup %2635 }
 0xa2c   :  { %v886_v39 = vmul.f32 %v2636_v62, %v3556_v43  ;;  %v2548_v62 = vld [vmem:[#allocation21 + $0x8] sm:$0xff]  }
 0xa31   :  { %v2511_v0 = vpop.permute.xlu0 %2510 }
 0xa32   :  { %v2513_v52 = vunpack.i.h.bf16 %v2511_v0  ;;  %v2512_v38 = vunpack.i.l.bf16 %v2511_v0 }
 0xa34   :  { %v1720_v60 = vsel %vm652_vm2, %v884_v11, %v2513_v52  ;;  %v1719_v61 = vsel %vm652_vm2, %v883_v48, %v2512_v38 }
 0xa39   :  { %v2516_v47 = vpop.permute.xlu1 %2515 }
 0xa3a   :  { %v2518_v27 = vunpack.i.h.bf16 %v2516_v47  ;;  %v2517_v24 = vunpack.i.l.bf16 %v2516_v47 }
 0xa3c   :  { %v1722_v63 = vsel %vm652_vm2, %v886_v39, %v2518_v27  ;;  %v1721_v40 = vsel %vm652_vm2, %v885_v58, %v2517_v24 }
 0xa3d   :  { %v2521_v51 = vpop.permute.xlu1 %2520 }
 0xa3e   :  { %v2523_v53 = vunpack.i.h.bf16 %v2521_v51  ;;  %v2522_v54 = vunpack.i.l.bf16 %v2521_v51 }
 0xa40   :  { %v1724_v17 = vsel %vm1723_vm3, %v1719_v61, %v2522_v54  ;;  %v1725_v37 = vsel %vm1723_vm3, %v1720_v60, %v2523_v53 }
 0xa41   :  { %v2526_v13 = vpop.permute.xlu1 %2525 }
 0xa42   :  { %v2528_v31 = vunpack.i.h.bf16 %v2526_v13  ;;  %v2527_v33 = vunpack.i.l.bf16 %v2526_v13 }
 0xa44   :  { %v1727_v1 = vsel %vm1723_vm3, %v1722_v63, %v2528_v31  ;;  %v1726_v10 = vsel %vm1723_vm3, %v1721_v40, %v2527_v33 }
 0xa59   :  { %v1610_v28 = vpop.f32.mrb[28].mxu1 }
 0xa5a   :  { %v2436_v2 = vpop.f32.mrb[29].mxu1  ;;  %v1667_v29 = vmul.f32 %v2622_v14, %v1610_v28  ;;  %v1813_v14 = vld [vmem:[#allocation3] sm:$0xff] }
 0xa5b   :  { %v1613_v4 = vpop.f32.mrb[30].mxu1 }
 0xa5c   :  { %v1668_v3 = vmul.f32 %v2624_v21, %v1613_v4  ;;  %v2437_v5 = vpop.f32.mrb[31].mxu1 }
 0xa5d   :  { %v1814_v5 = vld [vmem:[#allocation3 + $0x8] sm:$0xff] }
 0xa5e   :  { %v2529_v7 = vpack.i.bf16 %v1668_v3, %v1667_v29  ;;  %v1815_v29 = vld [vmem:[#allocation3 + $0x10] sm:$0xff] }
 0xa5f   :  { %v1660_v8 = vpop.f32.mrb[48].mxu0 }
 0xa60   :  { %2530 = vrot.lane.b32.xlu0 %v2529_v7, %s3048_s23  ;;  %v2444_v16 = vpop.f32.mrb[49].mxu0  ;;  %v1669_v23 = vmul.f32 %v2626_v15, %v1660_v8 }
 0xa61   :  { %v1663_v22 = vpop.f32.mrb[50].mxu0 }
 0xa62   :  { %v1670_v25 = vmul.f32 %v2628_v18, %v1663_v22  ;;  %v2445_v30 = vpop.f32.mrb[51].mxu0 }
 0xa64   :  { %v2534_v32 = vpack.i.bf16 %v1670_v25, %v1669_v23  ;;  %v1816_v23 = vld [vmem:[#allocation3 + $0x18] sm:$0xff] }
 0xa66   :  { %2535 = vrot.lane.b32.xlu1 %v2534_v32, %s3048_s23 }
 0xad2   :  { %v2531_v59 = vpop.permute.xlu0 %2530 }
 0xad3   :  { %v2533_v49 = vunpack.i.h.bf16 %v2531_v59  ;;  %v2532_v19 = vunpack.i.l.bf16 %v2531_v59 }
 0xad5   :  { %v1729_v26 = vsel %vm1728_vm4, %v1724_v17, %v2532_v19  ;;  %v1730_v20 = vsel %vm1728_vm4, %v1725_v37, %v2533_v49  ;;  %v2547_v19 = vld [vmem:[#allocation21] sm:$0xff]   ;;  %v2549_v17 = vld [vmem:[#allocation24] sm:$0xff]  }
 0xad6   :  { %v1733_v35 = vpack.c.bf16 %v1730_v20, %v1729_v26  ;;  %2454 = vmatprep.subr.bf16.mxu0 %v2547_v19  ;;  %v2550_v37 = vld [vmem:[#allocation24 + $0x8] sm:$0xff]   ;;  %2462 = vmatprep.subr.bf16.mxu1 %v2549_v17 }
 0xad7   :  { %2455 = vmatpush3.bf16.msra.mxu0 %v2547_v19 }
 0xad8   :  { %2450 = vmatprep.mubr.msk.bf16.mxu1 %vm247_vm0, %v1733_v35  ;;  %v2536_v55 = vpop.permute.xlu1 %2535  ;;  %2456 = vmatprep.subr.bf16.mxu0 %v2548_v62 }
 0xad9   :  { %v2538_v12 = vunpack.i.h.bf16 %v2536_v55  ;;  %v2537_v44 = vunpack.i.l.bf16 %v2536_v55 }
 0xadb   :  { %v1732_v9 = vsel %vm1728_vm4, %v1727_v1, %v2538_v12  ;;  %v1731_v36 = vsel %vm1728_vm4, %v1726_v10, %v2537_v44  ;;  %2457 = vmatpush3.bf16.msra.mxu0 %v2548_v62  ;;  %v2188_v44 = vld [vmem:[#allocation18] ss:$0 sm:$0xff] }
 0xadc   :  { %v1734_v43 = vpack.c.bf16 %v1732_v9, %v1731_v36 }
 0xade   :  { %2451 = vmatmul.mubr.msk.bf16.vlgmr.msra.gmra.mrb[32].mxu1 %vm247_vm0, %v1734_v43 }
 0xadf   :  { %2463 = vmatpush3.bf16.msra.mxu1 %v2549_v17 }
 0xae0   :  { %2464 = vmatprep.subr.bf16.mxu1 %v2550_v37 }
 0xae3   :  { %2465 = vmatpush3.bf16.msra.mxu1 %v2550_v37 }
 0xbb1   :  { %v2452_v28 = vpop.f32.mrb[32].mxu1 }
 0xbb2   :  { %v1798_v6 = vpop.f32.mrb[33].mxu1  ;;  %v1807_v2 = vadd.f32 %v2452_v28, %v2183_v41 }
 0xbb3   :  { %v1799_v21 = vadd.f32 %v2183_v41, %v1798_v6  ;;  %v2453_v4 = vpop.f32.mrb[34].mxu1 }
 0xbb4   :  { %v1801_v3 = vpop.f32.mrb[35].mxu1  ;;  %v3740_v15 = vadd.f32 %v1815_v29, %v1807_v2  ;;  %v1810_v16 = vadd.f32 %v2453_v4, %v2183_v41 }
 0xbb5   :  { %v3738_v7 = vadd.f32 %v1813_v14, %v1799_v21  ;;  %v1802_v8 = vadd.f32 %v2183_v41, %v1801_v3  ;;  %v2189_v41 = vld [vmem:[#allocation20] ss:$0 sm:$0xff] }
 0xbb6   :  { %v3748_v30 = vadd.f32 %v1816_v23, %v1810_v16  ;;  %v1829_v32 = vsel %vm247_vm0, %v3740_v15, 0.0  ;;  %v2551_v23 = vld [vmem:[#allocation24 + $0x10] sm:$0xff]  }
 0xbb7   :  { %v3742_v18 = vadd.f32 %v1814_v5, %v1802_v8  ;;  %v1823_v22 = vsel %vm247_vm0, %v3738_v7, 0.0  ;;  %2466 = vmatprep.subr.bf16.mxu1 %v2551_v23 }
 0xbb8   :  { %1824 = vadd.xlane.f32.xlu0 %v1823_v22  ;;  %v1832_v34 = vsel %vm247_vm0, %v3748_v30, 0.0  ;;  %2467 = vmatpush3.bf16.msra.mxu1 %v2551_v23 }
 0xbb9   :  { %v1826_v25 = vsel %vm247_vm0, %v3742_v18, 0.0 }
 0xbba   :  { %1827 = vadd.xlane.f32.xlu1 %v1826_v25  ;;  %v2552_v25 = vld [vmem:[#allocation24 + $0x18] sm:$0xff]  }
 0xbbb   :  { %2468 = vmatprep.subr.bf16.mxu1 %v2552_v25 }
 0xbbc   :  { %1830 = vadd.xlane.f32.xlu0 %v1829_v32  ;;  %2469 = vmatpush3.bf16.msra.mxu1 %v2552_v25  ;;  %v2553_v32 = vld [vmem:[#allocation24 + $0x20] sm:$0xff]  }
 0xbbd   :  { %2470 = vmatprep.subr.bf16.mxu1 %v2553_v32 }
 0xbc0   :  { %1833 = vadd.xlane.f32.xlu0 %v1832_v34  ;;  %2471 = vmatpush3.bf16.msra.mxu1 %v2553_v32  ;;  %v2554_v34 = vld [vmem:[#allocation24 + $0x28] sm:$0xff]  }
 0xbc1   :  { %2472 = vmatprep.subr.bf16.mxu1 %v2554_v34 }
 0xbc4   :  { %2473 = vmatpush3.bf16.msra.mxu1 %v2554_v34 }
 0xc45   :  { %v1825_v42 = vpop.xlane.xlu0 %1824 }
 0xc46   :  { %v1835_v45 = vmul.f32 0.03125, %v1825_v42  ;;  %v2555_v42 = vld [vmem:[#allocation24 + $0x30] sm:$0xff]  }
 0xc47   :  { %v1828_v46 = vpop.xlane.xlu1 %1827  ;;  %2474 = vmatprep.subr.bf16.mxu1 %v2555_v42 }
 0xc48   :  { %v1839_v47 = vsub.f32 %v3738_v7, %v1835_v45  ;;  %v1836_v0 = vmul.f32 0.03125, %v1828_v46  ;;  %2475 = vmatpush3.bf16.msra.mxu1 %v2555_v42  ;;  %v2556_v45 = vld [vmem:[#allocation24 + $0x38] sm:$0xff]  }
 0xc49   :  { %v1831_v50 = vpop.xlane.xlu0 %1830  ;;  %2476 = vmatprep.subr.bf16.mxu1 %v2556_v45  ;;  %v2190_v46 = vld [vmem:[#allocation23] ss:$0 sm:$0xff] }
 0xc4a   :  { %v1840_v51 = vsub.f32 %v3742_v18, %v1836_v0  ;;  %v1837_v56 = vmul.f32 0.03125, %v1831_v50  ;;  %v1843_v52 = vmul.f32 %v1839_v47, %v1839_v47 }
 0xc4c   :  { %v1841_v38 = vsub.f32 %v3740_v15, %v1837_v56  ;;  %v1847_v53 = vsel %vm247_vm0, %v1843_v52, 0.0  ;;  %v1844_v54 = vmul.f32 %v1840_v51, %v1840_v51  ;;  %2477 = vmatpush3.bf16.msra.mxu1 %v2556_v45 }
 0xc4d   :  { %1848 = vadd.xlane.f32.xlu0 %v1847_v53  ;;  %v1834_v48 = vpop.xlane.xlu0 %1833 }
 0xc4e   :  { %v1838_v11 = vmul.f32 0.03125, %v1834_v48  ;;  %v1850_v59 = vsel %vm247_vm0, %v1844_v54, 0.0  ;;  %v1845_v57 = vmul.f32 %v1841_v38, %v1841_v38 }
 0xc4f   :  { %1851 = vadd.xlane.f32.xlu1 %v1850_v59 }
 0xc50   :  { %v1842_v60 = vsub.f32 %v3748_v30, %v1838_v11  ;;  %v1853_v61 = vsel %vm247_vm0, %v1845_v57, 0.0 }
 0xc51   :  { %1854 = vadd.xlane.f32.xlu0 %v1853_v61 }
 0xc52   :  { %v1846_v13 = vmul.f32 %v1842_v60, %v1842_v60 }
 0xc54   :  { %v1856_v49 = vsel %vm247_vm0, %v1846_v13, 0.0 }
 0xc55   :  { %1857 = vadd.xlane.f32.xlu1 %v1856_v49 }
 0xcda   :  { %v1849_v27 = vpop.xlane.xlu0 %1848 }
 0xcdb   :  { %v1859_v24 = vmul.f32 0.03125, %v1849_v27 }
 0xcdc   :  { %v1852_v26 = vpop.xlane.xlu1 %1851 }
 0xcdd   :  { %v1863_v20 = vadd.f32 1e-05, %v1859_v24  ;;  %v1860_v31 = vmul.f32 0.03125, %v1852_v26 }
 0xcde   :  { %v1855_v33 = vpop.xlane.xlu0 %1854 }
 0xcdf   :  { %2637 = vrsqrt.f32 %v1863_v20  ;;  %v1864_v35 = vadd.f32 1e-05, %v1860_v31  ;;  %v1861_v39 = vmul.f32 0.03125, %v1855_v33 }
 0xce1   :  { %2639 = vrsqrt.f32 %v1864_v35  ;;  %v1865_v58 = vadd.f32 1e-05, %v1861_v39 }
 0xce2   :  { %v1858_v55 = vpop.xlane.xlu1 %1857 }
 0xce3   :  { %2641 = vrsqrt.f32 %v1865_v58  ;;  %v1862_v63 = vmul.f32 0.03125, %v1858_v55  ;;  %v2195_v55 = vld [vmem:[#allocation26] ss:$0 sm:$0xff] }
 0xce5   :  { %v1866_v40 = vadd.f32 1e-05, %v1862_v63 }
 0xce7   :  { %2643 = vrsqrt.f32 %v1866_v40 }
 0xce9   :  { %v2638_v12 = vpop.eup %2637 }
 0xcea   :  { %v1871_v1 = vmul.f32 %v2638_v12, %v1839_v47 }
 0xceb   :  { %v2640_v10 = vpop.eup %2639 }
 0xcec   :  { %v1872_v9 = vmul.f32 %v2640_v10, %v1840_v51  ;;  %v1881_v36 = vmul.f32 %v2188_v44, %v1871_v1 }
 0xced   :  { %v2642_v43 = vpop.eup %2641 }
 0xcee   :  { %v1873_v28 = vmul.f32 %v2642_v43, %v1841_v38  ;;  %v1882_v6 = vmul.f32 %v2188_v44, %v1872_v9  ;;  %v1891_v14 = vadd.f32 %v2189_v41, %v1881_v36 }
 0xcf0   :  { %v1892_v2 = vadd.f32 %v2189_v41, %v1882_v6  ;;  %v1883_v4 = vmul.f32 %v2188_v44, %v1873_v28 }
 0xcf1   :  { %v2644_v21 = vpop.eup %2643 }
 0xcf2   :  { %v1874_v29 = vmul.f32 %v2644_v21, %v1842_v60  ;;  %v1895_v3 = vpack.c.bf16 %v1892_v2, %v1891_v14  ;;  %v1893_v8 = vadd.f32 %v2189_v41, %v1883_v4 }
 0xcf4   :  { %v1884_v5 = vmul.f32 %v2188_v44, %v1874_v29  ;;  %2458 = vmatprep.mubr.msk.bf16.mxu0 %vm247_vm0, %v1895_v3 }
 0xcf6   :  { %v1894_v16 = vadd.f32 %v2189_v41, %v1884_v5 }
 0xcf8   :  { %v1896_v22 = vpack.c.bf16 %v1894_v16, %v1893_v8 }
 0xcfa   :  { %2459 = vmatmul.mubr.msk.bf16.vlgmr.msra.gmra.mrb[52].mxu0 %vm247_vm0, %v1896_v22 }
 0xdcd   :  { %v2460_v47 = vpop.f32.mrb[52].mxu0 }
 0xdce   :  { %v1969_v0 = vadd.f32 %v2460_v47, %v2190_v46  ;;  %v1960_v50 = vpop.f32.mrb[53].mxu0 }
 0xdcf   :  { %v1961_v51 = vadd.f32 %v2190_v46, %v1960_v50  ;;  %v2461_v56 = vpop.f32.mrb[54].mxu0 }
 0xdd0   :  { %v1981_v52 = vmul.f32 0.70710677, %v1969_v0  ;;  %v1972_v38 = vadd.f32 %v2461_v56, %v2190_v46  ;;  %v1963_v53 = vpop.f32.mrb[55].mxu0  ;;  %v1977_v62 = vmul.f32 0.5, %v1969_v0 }
 0xdd1   :  { %v1979_v54 = vmul.f32 0.70710677, %v1961_v51  ;;  %v1964_v48 = vadd.f32 %v2190_v46, %v1963_v53  ;;  %v1975_v27 = vmul.f32 0.5, %v1961_v51 }
 0xdd2   :  { %2645 = verf.f32 %v1981_v52  ;;  %v1982_v11 = vmul.f32 0.70710677, %v1972_v38  ;;  %v1978_v17 = vmul.f32 0.5, %v1972_v38 }
 0xdd3   :  { %2647 = verf.f32 %v1979_v54  ;;  %v1980_v59 = vmul.f32 0.70710677, %v1964_v48  ;;  %v1976_v24 = vmul.f32 0.5, %v1964_v48 }
 0xdd4   :  { %2649 = verf.f32 %v1982_v11 }
 0xdd5   :  { %2651 = verf.f32 %v1980_v59 }
 0xddc   :  { %v2646_v57 = vpop.eup %2645 }
 0xddd   :  { %v2648_v60 = vpop.eup %2647  ;;  %v1989_v61 = vadd.f32 1.0, %v2646_v57 }
 0xdde   :  { %v2650_v13 = vpop.eup %2649  ;;  %v1987_v49 = vadd.f32 1.0, %v2648_v60 }
 0xddf   :  { %v2652_v19 = vpop.eup %2651  ;;  %v1990_v37 = vadd.f32 1.0, %v2650_v13  ;;  %v1993_v20 = vmul.f32 %v1989_v61, %v1977_v62 }
 0xde0   :  { %v1988_v26 = vadd.f32 1.0, %v2652_v19  ;;  %v1991_v33 = vmul.f32 %v1987_v49, %v1975_v27 }
 0xde1   :  { %v1994_v31 = vmul.f32 %v1990_v37, %v1978_v17 }
 0xde2   :  { %v1992_v35 = vmul.f32 %v1988_v26, %v1976_v24 }
 0xde3   :  { %v1996_v39 = vpack.c.bf16 %v1994_v31, %v1993_v20 }
 0xde4   :  { %v1995_v58 = vpack.c.bf16 %v1992_v35, %v1991_v33 }
 0xde6   :  { %2478 = vmatprep.mubr.bf16.mxu1 %v1995_v58 }
 0xde7   :  { %2479 = vmatmul.mubr.bf16.vlgmr.msra.gmra.mrb[36].mxu1 %v1996_v39 }
 0xeba   :  { %v2480_v63 = vpop.f32.mrb[36].mxu1 }
 0xebb   :  { %v2111_v40 = vadd.f32 %v2480_v63, %v2195_v55  ;;  %v2102_v12 = vpop.f32.mrb[37].mxu1 }
 0xebc   :  { %v2103_v44 = vadd.f32 %v2195_v55, %v2102_v12  ;;  %v2481_v1 = vpop.f32.mrb[38].mxu1 }
 0xebd   :  { %v2119_v10 = vadd.f32 %v2111_v40, %v3740_v15  ;;  %v2114_v9 = vadd.f32 %v2481_v1, %v2195_v55  ;;  %v2105_v36 = vpop.f32.mrb[39].mxu1 }
 0xebe   :  { %v2117_v43 = vadd.f32 %v2103_v44, %v3738_v7  ;;  %v2106_v41 = vadd.f32 %v2195_v55, %v2105_v36 }
 0xebf   :  { %2123 = vst.msk [vmem:[#allocation27 + $0x10] sm:$0xff] %vm247_vm0, %v2119_v10  ;;  %v2120_v28 = vadd.f32 %v2114_v9, %v3748_v30 }
 0xec0   :  { %2121 = vst.msk [vmem:[#allocation27] sm:$0xff] %vm247_vm0, %v2117_v43  ;;  %v2118_v6 = vadd.f32 %v2106_v41, %v3742_v18 }
 0xec1   :  { %2124 = vst.msk [vmem:[#allocation27 + $0x18] sm:$0xff] %vm247_vm0, %v2120_v28 }
 0xec2   :  { %2122 = vst.msk [vmem:[#allocation27 + $0x8] sm:$0xff] %vm247_vm0, %v2118_v6 }
 0xec3   :  { %2994 = shalt.err (!%p2991_p12)
}
 0xec4   :  { %s2995_s27 = scalar_lea.hbm %s3802_s15, 512 }
 0xec5   :  { %p2996_p13 = scmp.ne.s32.totalorder %s3802_s15, %s2995_s27  ;;  %p2999_p0 = scmp.lt.u32.totalorder %s2995_s27, %s3802_s15 }
 0xec7   :  { %p3001_p1 = pnand %p2999_p0, %p2996_p13 }
 0xec9   :  { %3004 = shalt.err (!%p3001_p1)
}
 0xeca   :  { %2136 = dma.vmem_to_hbm [thread:$0]  %s2131_s11, 512, %s3802_s15, [#allocation5], %s3025_s30, %s3025_s30, %s3026_s16  }
 0xecb   :  { %3021 = dma.done.wait [#allocation5], 512  }
 0xecc   :  { %3022 = vsyncadd [#allocation5], 4294966784 }
 0xecd   :  { %2140 = vsyncpa [#allocation4], 1 }
 0xece   :  { %2141 = vsyncpa [#allocation7], 1 }
 0xecf   :  { %2142 = vsyncpa [#allocation10], 1 }
 0xed0   :  { %2143 = vsyncpa [#allocation13], 1 }
 0xed1   :  { %2144 = vsyncpa [#allocation16], 1 }
 0xed2   :  { %2145 = vsyncpa [#allocation19], 1 }
 0xed3   :  { %2146 = vsyncpa [#allocation22], 1 }
 0xed4   :  { %2147 = vsyncpa [#allocation25], 1 }
 0xed5   :  { %2148 = vsyncpa [#allocation5], 1 }

</bundles_post_ra>
